<compile_context>
chip_gen: v7x
topology: tpu7x:2x2x1
jax: 0.10.0
libtpu: 0.0.40
codegen_flags: <defaults>
</compile_context>

<pallas_src>
import functools

import jax
import jax.numpy as jnp
from jax import lax
from jax.experimental import pallas as pl
from jax.experimental.pallas import tpu as pltpu

EMBED = 32
IN = 2 * EMBED          # 64, GRU input size
H = 64                  # GRU hidden size
NUM_CLASSES = 10
DENSE_PAD = 128         # lane-dense padded dense-head width
LAYERS = 2
MAX_TC = 2048           # max timesteps per grid step (chunk)


def gru_chunk_kernel(x_ref,
                     wih0_ref, whh0_ref, wih1_ref, whh1_ref,
                     bih0_ref, bhh0_ref, bih1_ref, bhh1_ref,
                     wd_ref, bd_ref,
                     out_ref,
                     h_ref, gi0_ref, h1seq_ref,
                     *, steps_per_slab):
    # x_ref:     (TC*B, IN)      time-major flat chunk, bf16
    # out_ref:   (TC*B, 128)     lane-dense padded logits, f32
    # h_ref:     (LAYERS, B, H)  hidden carry, persists across chunks (f32)
    # gi0_ref:   (TC*B, 3H)      hoisted layer-0 input projection (f32)
    # h1seq_ref: (TC*B, H)       layer-1 outputs for the whole chunk (f32)
    B = h_ref.shape[1]
    rows = x_ref.shape[0]
    TC = rows // B
    num_slabs = TC // steps_per_slab
    slab_rows = steps_per_slab * B

    @pl.when(pl.program_id(0) == 0)
    def _():
        h_ref[...] = jnp.zeros_like(h_ref)

    # ---- hoisted whole-chunk layer-0 input GEMM (bf16 operands, f32 acc) ----
    gi0_ref[...] = (jnp.dot(x_ref[...], wih0_ref[...],
                            preferred_element_type=jnp.float32)
                    + bih0_ref[...])

    # loop-invariant bf16 weights and pre-broadcast f32 biases (once per chunk)
    whh0 = whh0_ref[...]
    wih1 = wih1_ref[...]
    whh1 = whh1_ref[...]
    bhh0 = jnp.broadcast_to(bhh0_ref[...], (B, 3 * H))
    bih1 = jnp.broadcast_to(bih1_ref[...], (B, 3 * H))
    bhh1 = jnp.broadcast_to(bhh1_ref[...], (B, 3 * H))

    def gates(gi, gh, h):
        # 192-wide gate layout [r | z | n]; one sigmoid over the r|z half,
        # z extraction is a single 64-lane slice (XLU), n half starts lane-0
        # of the second vreg group.
        rz = jax.nn.sigmoid(gi[:, 0:2 * H] + gh[:, 0:2 * H])
        r = rz[:, 0:H]
        z = rz[:, H:2 * H]
        n = jnp.tanh(gi[:, 2 * H:3 * H] + r * gh[:, 2 * H:3 * H])
        return (1.0 - z) * n + z * h

    def slab_step(s, carry):
        h0, h1 = carry
        row0 = pl.multiple_of(s * slab_rows, slab_rows)
        # ONE aligned (8, 3H) load per slab; timesteps sliced in-register.
        gi0_slab = gi0_ref[pl.ds(row0, slab_rows), :]
        h1_parts = []
        for j in range(steps_per_slab):
            gi0 = gi0_slab[j * B:(j + 1) * B, :]
            gh0 = jnp.dot(h0.astype(jnp.bfloat16), whh0,
                          preferred_element_type=jnp.float32) + bhh0
            h0 = gates(gi0, gh0, h0)

            gi1 = jnp.dot(h0.astype(jnp.bfloat16), wih1,
                          preferred_element_type=jnp.float32) + bih1
            gh1 = jnp.dot(h1.astype(jnp.bfloat16), whh1,
                          preferred_element_type=jnp.float32) + bhh1
            h1 = gates(gi1, gh1, h1)
            h1_parts.append(h1)
        # ONE aligned (8, H) store per slab.
        h1seq_ref[pl.ds(row0, slab_rows), :] = jnp.concatenate(h1_parts, axis=0)
        return (h0, h1)

    h0, h1 = lax.fori_loop(0, num_slabs, slab_step, (h_ref[0], h_ref[1]),
                           unroll=min(num_slabs, 2))
    h_ref[0] = h0
    h_ref[1] = h1

    # ---- hoisted lane-dense dense head over the whole chunk; one bulk store ----
    out_ref[...] = (jnp.dot(h1seq_ref[...].astype(jnp.bfloat16), wd_ref[...],
                            preferred_element_type=jnp.float32)
                    + bd_ref[...])


def init_params(key):
    ks = jax.random.split(key, 12)
    scale = 1.0 / jnp.sqrt(jnp.float32(H))

    def u(k, shape):
        return jax.random.uniform(k, shape, jnp.float32, -scale, scale)

    # GRU weights stored pre-transposed (input_dim, 3H) so the kernel does x @ W.
    return {
        "embedding": jax.random.normal(ks[0], (10, EMBED), jnp.float32),
        "w_ih_l0_t": u(ks[1], (IN, 3 * H)),
        "w_hh_l0_t": u(ks[2], (H, 3 * H)),
        "b_ih_l0":   u(ks[3], (1, 3 * H)),
        "b_hh_l0":   u(ks[4], (1, 3 * H)),
        "w_ih_l1_t": u(ks[5], (H, 3 * H)),
        "w_hh_l1_t": u(ks[6], (H, 3 * H)),
        "b_ih_l1":   u(ks[7], (1, 3 * H)),
        "b_hh_l1":   u(ks[8], (1, 3 * H)),
        "w_dense_t": u(ks[9], (H, NUM_CLASSES)),
        "b_dense":   u(ks[10], (1, NUM_CLASSES)),
    }


def forward(num1, num2, p):
    """Pallas version of myAdvPTRNNModel.forward.  num1/num2: (B, T) int32 in [0,10)."""
    B, T = num1.shape

    # Build x time-major without a float transpose (transpose the tiny int ids).
    n1 = jnp.transpose(num1)                                   # (T, B)
    n2 = jnp.transpose(num2)
    e1 = jnp.take(p["embedding"], n1, axis=0)                  # (T, B, 32)
    e2 = jnp.take(p["embedding"], n2, axis=0)                  # (T, B, 32)
    x = jnp.concatenate([e1, e2], axis=-1)                     # (T, B, 64) f32
    # TODO(synk): for very long T, fuse this gather into the kernel
    # (num_scalar_prefetch ids + VMEM-resident 10x32 table) to skip the HBM round trip.

    # Slab size: 8 sublane-aligned rows per gi0 load / h1 store.
    if B % 8 == 0:
        steps_per_slab = 1                 # each step's B rows already aligned
    elif 8 % B == 0:
        steps_per_slab = 8 // B            # e.g. B=2 -> 4 timesteps per slab
    else:
        steps_per_slab = 1                 # TODO(synk): odd B falls back to unaligned rows

    def round_up(a, m):
        return -(-a // m) * m

    if T <= MAX_TC:
        TC = round_up(T, steps_per_slab)
    else:
        TC = round_up(MAX_TC, steps_per_slab)
    T_pad = round_up(T, TC)
    num_chunks = T_pad // TC
    if T_pad != T:
        # Padded (zero) timesteps run through the recurrence; safe because the
        # final hidden state is never returned and padded outputs are sliced off.
        x = jnp.pad(x, ((0, T_pad - T), (0, 0), (0, 0)))

    # Free row-major reshape; bf16 MXU operand (halves the x DMA too).
    x2 = x.reshape(T_pad * B, IN).astype(jnp.bfloat16)

    bf = jnp.bfloat16
    wih0 = p["w_ih_l0_t"].astype(bf)
    whh0 = p["w_hh_l0_t"].astype(bf)
    wih1 = p["w_ih_l1_t"].astype(bf)
    whh1 = p["w_hh_l1_t"].astype(bf)
    bih0, bhh0 = p["b_ih_l0"], p["b_hh_l0"]           # biases stay f32
    bih1, bhh1 = p["b_ih_l1"], p["b_hh_l1"]

    # Lane-dense dense head: zero-pad to 128 output lanes (zeros never read back).
    wd = jnp.zeros((H, DENSE_PAD), bf).at[:, :NUM_CLASSES].set(
        p["w_dense_t"].astype(bf))
    bd = jnp.zeros((1, DENSE_PAD), jnp.float32).at[:, :NUM_CLASSES].set(
        p["b_dense"])

    def full(shape):
        return pl.BlockSpec(shape, lambda c: (0,) * len(shape))

    grid_spec = pltpu.PrefetchScalarGridSpec(
        num_scalar_prefetch=0,
        grid=(num_chunks,),
        in_specs=[
            pl.BlockSpec((TC * B, IN), lambda c: (c, 0)),
            full((IN, 3 * H)), full((H, 3 * H)), full((H, 3 * H)), full((H, 3 * H)),
            full((1, 3 * H)), full((1, 3 * H)), full((1, 3 * H)), full((1, 3 * H)),
            full((H, DENSE_PAD)), full((1, DENSE_PAD)),
        ],
        out_specs=pl.BlockSpec((TC * B, DENSE_PAD), lambda c: (c, 0)),
        scratch_shapes=[
            pltpu.VMEM((LAYERS, B, H), jnp.float32),       # hidden-state carry
            pltpu.VMEM((TC * B, 3 * H), jnp.float32),      # hoisted layer-0 gi
            pltpu.VMEM((TC * B, H), jnp.float32),          # layer-1 outputs
        ],
    )

    kernel = functools.partial(gru_chunk_kernel, steps_per_slab=steps_per_slab)

    logits2 = pl.pallas_call(
        kernel,
        out_shape=jax.ShapeDtypeStruct((T_pad * B, DENSE_PAD), jnp.float32),
        grid_spec=grid_spec,
        compiler_params=pltpu.CompilerParams(
            dimension_semantics=("arbitrary",),            # time is sequential
            vmem_limit_bytes=32 * 1024 * 1024),
    )(x2, wih0, whh0, wih1, whh1, bih0, bhh0, bih1, bhh1, wd, bd)

    logits_tm = logits2.reshape(T_pad, B, DENSE_PAD)[:T, :, :NUM_CLASSES]
    return jnp.transpose(logits_tm, (1, 0, 2))             # (B, T, 10)


# ---------------- pure-JAX references ----------------

def _gru_cell(x, h, w_ih_t, w_hh_t, b_ih, b_hh, mm_dtype):
    gi = jnp.dot(x.astype(mm_dtype), w_ih_t.astype(mm_dtype),
                 preferred_element_type=jnp.float32) + b_ih
    gh = jnp.dot(h.astype(mm_dtype), w_hh_t.astype(mm_dtype),
                 preferred_element_type=jnp.float32) + b_hh
    r = jax.nn.sigmoid(gi[:, 0:H] + gh[:, 0:H])
    z = jax.nn.sigmoid(gi[:, H:2 * H] + gh[:, H:2 * H])
    n = jnp.tanh(gi[:, 2 * H:3 * H] + r * gh[:, 2 * H:3 * H])
    return (1.0 - z) * n + z * h


def forward_reference(num1, num2, p, mm_dtype=jnp.float32):
    """Same math as the PyTorch module; mm_dtype controls matmul-operand precision."""
    e1 = jnp.take(p["embedding"], num1, axis=0)
    e2 = jnp.take(p["embedding"], num2, axis=0)
    x = jnp.transpose(jnp.concatenate([e1, e2], -1), (1, 0, 2))  # (T, B, 64)
    B = x.shape[1]

    def step(carry, x_t):
        h0, h1 = carry
        h0 = _gru_cell(x_t, h0, p["w_ih_l0_t"], p["w_hh_l0_t"],
                       p["b_ih_l0"], p["b_hh_l0"], mm_dtype)
        h1 = _gru_cell(h0, h1, p["w_ih_l1_t"], p["w_hh_l1_t"],
                       p["b_ih_l1"], p["b_hh_l1"], mm_dtype)
        return (h0, h1), h1

    init = (jnp.zeros((B, H), jnp.float32), jnp.zeros((B, H), jnp.float32))
    _, outs = jax.lax.scan(step, init, x)                        # (T, B, H)
    logits = jnp.dot(outs.astype(mm_dtype), p["w_dense_t"].astype(mm_dtype),
                     preferred_element_type=jnp.float32) + p["b_dense"]
    return jnp.transpose(logits, (1, 0, 2))                      # (B, T, 10)


if __name__ == "__main__":
    key = jax.random.PRNGKey(0)
    k_param, k_n1, k_n2 = jax.random.split(key, 3)

    params = init_params(k_param)

    B, T = 2, 8
    num1 = jax.random.randint(k_n1, (B, T), 0, 10, dtype=jnp.int32)
    num2 = jax.random.randint(k_n2, (B, T), 0, 10, dtype=jnp.int32)

    logits = forward(num1, num2, params)
    jax.block_until_ready(logits)

    # Reference with matching (bf16-operand, f32-accumulate) matmul precision.
    ref_bf16 = forward_reference(num1, num2, params, mm_dtype=jnp.bfloat16)
    jax.block_until_ready(ref_bf16)
    # Full-f32 reference: looser tolerance covers only the bf16 operand cast.
    ref_f32 = forward_reference(num1, num2, params, mm_dtype=jnp.float32)
    jax.block_until_ready(ref_f32)

    assert logits.shape == (B, T, NUM_CLASSES), logits.shape
    assert jnp.allclose(logits, ref_bf16, atol=1e-3, rtol=1e-3), "mismatch vs bf16 reference"
    assert jnp.allclose(logits, ref_f32, atol=5e-2, rtol=5e-2), "mismatch vs f32 reference"

    print("KERNEL_OK")
</pallas_src>

<mosaic_0001>
module attributes {stable_mosaic.version = 11 : i64} {
  func.func @gru_chunk_kernel(%arg0: i32, %arg1: memref<16x64xbf16, #tpu.memory_space<vmem>>, %arg2: memref<64x192xbf16, #tpu.memory_space<vmem>>, %arg3: memref<64x192xbf16, #tpu.memory_space<vmem>>, %arg4: memref<64x192xbf16, #tpu.memory_space<vmem>>, %arg5: memref<64x192xbf16, #tpu.memory_space<vmem>>, %arg6: memref<1x192xf32, #tpu.memory_space<vmem>>, %arg7: memref<1x192xf32, #tpu.memory_space<vmem>>, %arg8: memref<1x192xf32, #tpu.memory_space<vmem>>, %arg9: memref<1x192xf32, #tpu.memory_space<vmem>>, %arg10: memref<64x128xbf16, #tpu.memory_space<vmem>>, %arg11: memref<1x128xf32, #tpu.memory_space<vmem>>, %arg12: memref<16x128xf32, #tpu.memory_space<vmem>>, %arg13: memref<2x2x64xf32, #tpu.memory_space<vmem>>, %arg14: memref<16x192xf32, #tpu.memory_space<vmem>>, %arg15: memref<16x64xf32, #tpu.memory_space<vmem>>) attributes {dimension_semantics = [#tpu.dimension_semantics<arbitrary>], iteration_bounds = array<i64: 1>, scalar_prefetch = 0 : i64, scratch_operands = 3 : i64, tpu.core_type = #tpu.core_type<tc>, window_params = [{transform_indices = @transform_0, window_bounds = array<i64: 16, 64>}, {pipeline_mode = #tpu.pipeline_mode<synchronous>, transform_indices = @transform_1, window_bounds = array<i64: 64, 192>}, {pipeline_mode = #tpu.pipeline_mode<synchronous>, transform_indices = @transform_2, window_bounds = array<i64: 64, 192>}, {pipeline_mode = #tpu.pipeline_mode<synchronous>, transform_indices = @transform_3, window_bounds = array<i64: 64, 192>}, {pipeline_mode = #tpu.pipeline_mode<synchronous>, transform_indices = @transform_4, window_bounds = array<i64: 64, 192>}, {pipeline_mode = #tpu.pipeline_mode<synchronous>, transform_indices = @transform_5, window_bounds = array<i64: 1, 192>}, {pipeline_mode = #tpu.pipeline_mode<synchronous>, transform_indices = @transform_6, window_bounds = array<i64: 1, 192>}, {pipeline_mode = #tpu.pipeline_mode<synchronous>, transform_indices = @transform_7, window_bounds = array<i64: 1, 192>}, {pipeline_mode = #tpu.pipeline_mode<synchronous>, transform_indices = @transform_8, window_bounds = array<i64: 1, 192>}, {pipeline_mode = #tpu.pipeline_mode<synchronous>, transform_indices = @transform_9, window_bounds = array<i64: 64, 128>}, {pipeline_mode = #tpu.pipeline_mode<synchronous>, transform_indices = @transform_10, window_bounds = array<i64: 1, 128>}, {transform_indices = @transform_11, window_bounds = array<i64: 16, 128>}]} {
    %c0_i32 = arith.constant 0 : i32
    %0 = arith.cmpi eq, %arg0, %c0_i32 : i32
    %1 = arith.extui %0 : i1 to i32
    %c0_i32_0 = arith.constant 0 : i32
    %2 = arith.cmpi ne, %1, %c0_i32_0 : i32
    scf.if %2 {
      %cst_102 = arith.constant 0.000000e+00 : f32
      %454 = vector.broadcast %cst_102 : f32 to vector<2x2x64xf32>
      %c0_103 = arith.constant 0 : index
      %c0_104 = arith.constant 0 : index
      %c0_105 = arith.constant 0 : index
      %455 = vector.load %arg13[%c0_103, %c0_104, %c0_105] : memref<2x2x64xf32, #tpu.memory_space<vmem>>, vector<2x2x64xf32>
      tpu.vector_store %arg13[%c0_103, %c0_104, %c0_105], %454 {strides = array<i32>} : memref<2x2x64xf32, #tpu.memory_space<vmem>>, vector<2x2x64xf32>,
    } else {
    }
    %c0 = arith.constant 0 : index
    %c0_1 = arith.constant 0 : index
    %3 = vector.load %arg1[%c0, %c0_1] : memref<16x64xbf16, #tpu.memory_space<vmem>>, vector<16x64xbf16>
    %c0_2 = arith.constant 0 : index
    %c0_3 = arith.constant 0 : index
    %4 = vector.load %arg2[%c0_2, %c0_3] : memref<64x192xbf16, #tpu.memory_space<vmem>>, vector<64x192xbf16>
    %cst = arith.constant dense<0.000000e+00> : vector<16x192xf32>
    %5 = tpu.matmul %3, %4, %cst {dimension_numbers = #tpu.dot_dimension_numbers<[1], [0], [0], [1], [0, 0, 1, 1], [], []>} : vector<16x64xbf16>, vector<64x192xbf16>, vector<16x192xf32> -> vector<16x192xf32>
    %c0_4 = arith.constant 0 : index
    %c0_5 = arith.constant 0 : index
    %6 = vector.load %arg6[%c0_4, %c0_5] : memref<1x192xf32, #tpu.memory_space<vmem>>, vector<1x192xf32>
    %7 = vector.broadcast %6 : vector<1x192xf32> to vector<16x192xf32>
    %8 = arith.addf %5, %7 : vector<16x192xf32>
    %c0_6 = arith.constant 0 : index
    %c0_7 = arith.constant 0 : index
    %9 = vector.load %arg14[%c0_6, %c0_7] : memref<16x192xf32, #tpu.memory_space<vmem>>, vector<16x192xf32>
    tpu.vector_store %arg14[%c0_6, %c0_7], %8 {strides = array<i32>} : memref<16x192xf32, #tpu.memory_space<vmem>>, vector<16x192xf32>,
    %c0_8 = arith.constant 0 : index
    %c0_9 = arith.constant 0 : index
    %10 = vector.load %arg3[%c0_8, %c0_9] : memref<64x192xbf16, #tpu.memory_space<vmem>>, vector<64x192xbf16>
    %c0_10 = arith.constant 0 : index
    %c0_11 = arith.constant 0 : index
    %11 = vector.load %arg4[%c0_10, %c0_11] : memref<64x192xbf16, #tpu.memory_space<vmem>>, vector<64x192xbf16>
    %c0_12 = arith.constant 0 : index
    %c0_13 = arith.constant 0 : index
    %12 = vector.load %arg5[%c0_12, %c0_13] : memref<64x192xbf16, #tpu.memory_space<vmem>>, vector<64x192xbf16>
    %c0_14 = arith.constant 0 : index
    %c0_15 = arith.constant 0 : index
    %13 = vector.load %arg7[%c0_14, %c0_15] : memref<1x192xf32, #tpu.memory_space<vmem>>, vector<1x192xf32>
    %14 = vector.shape_cast %13 : vector<1x192xf32> to vector<1x192xf32>
    %15 = vector.broadcast %14 : vector<1x192xf32> to vector<2x192xf32>
    %c0_16 = arith.constant 0 : index
    %c0_17 = arith.constant 0 : index
    %16 = vector.load %arg8[%c0_16, %c0_17] : memref<1x192xf32, #tpu.memory_space<vmem>>, vector<1x192xf32>
    %17 = vector.shape_cast %16 : vector<1x192xf32> to vector<1x192xf32>
    %18 = vector.broadcast %17 : vector<1x192xf32> to vector<2x192xf32>
    %c0_18 = arith.constant 0 : index
    %c0_19 = arith.constant 0 : index
    %19 = vector.load %arg9[%c0_18, %c0_19] : memref<1x192xf32, #tpu.memory_space<vmem>>, vector<1x192xf32>
    %20 = vector.shape_cast %19 : vector<1x192xf32> to vector<1x192xf32>
    %21 = vector.broadcast %20 : vector<1x192xf32> to vector<2x192xf32>
    %c0_20 = arith.constant 0 : index
    %c0_21 = arith.constant 0 : index
    %c0_22 = arith.constant 0 : index
    %22 = vector.load %arg13[%c0_20, %c0_21, %c0_22] : memref<2x2x64xf32, #tpu.memory_space<vmem>>, vector<1x2x64xf32>
    %23 = vector.shape_cast %22 : vector<1x2x64xf32> to vector<2x64xf32>
    %c1 = arith.constant 1 : index
    %c0_23 = arith.constant 0 : index
    %c0_24 = arith.constant 0 : index
    %24 = vector.load %arg13[%c1, %c0_23, %c0_24] : memref<2x2x64xf32, #tpu.memory_space<vmem>>, vector<1x2x64xf32>
    %25 = vector.shape_cast %24 : vector<1x2x64xf32> to vector<2x64xf32>
    %c0_i32_25 = arith.constant 0 : i32
    %c8_i32 = arith.constant 8 : i32
    %26 = arith.muli %c0_i32_25, %c8_i32 : i32
    %27 = tpu.assume_multiple %26, 8 : i32
    %28 = arith.index_cast %27 : i32 to index
    %c0_26 = arith.constant 0 : index
    %29 = vector.load %arg14[%28, %c0_26] : memref<16x192xf32, #tpu.memory_space<vmem>>, vector<8x192xf32>
    %30 = vector.extract_strided_slice %29 {offsets = [0, 0], sizes = [2, 192], strides = [1, 1]} : vector<8x192xf32> to vector<2x192xf32>
    %31 = arith.truncf %23 : vector<2x64xf32> to vector<2x64xbf16>
    %cst_27 = arith.constant dense<0.000000e+00> : vector<2x192xf32>
    %32 = tpu.matmul %31, %10, %cst_27 {dimension_numbers = #tpu.dot_dimension_numbers<[1], [0], [0], [1], [0, 0, 1, 1], [], []>} : vector<2x64xbf16>, vector<64x192xbf16>, vector<2x192xf32> -> vector<2x192xf32>
    %33 = arith.addf %32, %15 : vector<2x192xf32>
    %34 = vector.extract_strided_slice %30 {offsets = [0, 0], sizes = [2, 128], strides = [1, 1]} : vector<2x192xf32> to vector<2x128xf32>
    %35 = vector.extract_strided_slice %33 {offsets = [0, 0], sizes = [2, 128], strides = [1, 1]} : vector<2x192xf32> to vector<2x128xf32>
    %36 = arith.addf %34, %35 : vector<2x128xf32>
    %37 = arith.negf %36 : vector<2x128xf32>
    %38 = math.exp %37 : vector<2x128xf32>
    %cst_28 = arith.constant 1.000000e+00 : f32
    %39 = vector.broadcast %cst_28 : f32 to vector<2x128xf32>
    %40 = arith.addf %39, %38 : vector<2x128xf32>
    %41 = arith.divf %39, %40 : vector<2x128xf32>
    %42 = vector.extract_strided_slice %41 {offsets = [0, 0], sizes = [2, 64], strides = [1, 1]} : vector<2x128xf32> to vector<2x64xf32>
    %43 = vector.extract_strided_slice %41 {offsets = [0, 64], sizes = [2, 64], strides = [1, 1]} : vector<2x128xf32> to vector<2x64xf32>
    %44 = vector.extract_strided_slice %30 {offsets = [0, 128], sizes = [2, 64], strides = [1, 1]} : vector<2x192xf32> to vector<2x64xf32>
    %45 = vector.extract_strided_slice %33 {offsets = [0, 128], sizes = [2, 64], strides = [1, 1]} : vector<2x192xf32> to vector<2x64xf32>
    %46 = arith.mulf %42, %45 : vector<2x64xf32>
    %47 = arith.addf %44, %46 : vector<2x64xf32>
    %48 = math.tanh %47 : vector<2x64xf32>
    %cst_29 = arith.constant 1.000000e+00 : f32
    %49 = vector.broadcast %cst_29 : f32 to vector<2x64xf32>
    %50 = arith.subf %49, %43 : vector<2x64xf32>
    %51 = arith.mulf %50, %48 : vector<2x64xf32>
    %52 = arith.mulf %43, %23 : vector<2x64xf32>
    %53 = arith.addf %51, %52 : vector<2x64xf32>
    %54 = arith.truncf %53 : vector<2x64xf32> to vector<2x64xbf16>
    %cst_30 = arith.constant dense<0.000000e+00> : vector<2x192xf32>
    %55 = tpu.matmul %54, %11, %cst_30 {dimension_numbers = #tpu.dot_dimension_numbers<[1], [0], [0], [1], [0, 0, 1, 1], [], []>} : vector<2x64xbf16>, vector<64x192xbf16>, vector<2x192xf32> -> vector<2x192xf32>
    %56 = arith.addf %55, %18 : vector<2x192xf32>
    %57 = arith.truncf %25 : vector<2x64xf32> to vector<2x64xbf16>
    %cst_31 = arith.constant dense<0.000000e+00> : vector<2x192xf32>
    %58 = tpu.matmul %57, %12, %cst_31 {dimension_numbers = #tpu.dot_dimension_numbers<[1], [0], [0], [1], [0, 0, 1, 1], [], []>} : vector<2x64xbf16>, vector<64x192xbf16>, vector<2x192xf32> -> vector<2x192xf32>
    %59 = arith.addf %58, %21 : vector<2x192xf32>
    %60 = vector.extract_strided_slice %56 {offsets = [0, 0], sizes = [2, 128], strides = [1, 1]} : vector<2x192xf32> to vector<2x128xf32>
    %61 = vector.extract_strided_slice %59 {offsets = [0, 0], sizes = [2, 128], strides = [1, 1]} : vector<2x192xf32> to vector<2x128xf32>
    %62 = arith.addf %60, %61 : vector<2x128xf32>
    %63 = arith.negf %62 : vector<2x128xf32>
    %64 = math.exp %63 : vector<2x128xf32>
    %cst_32 = arith.constant 1.000000e+00 : f32
    %65 = vector.broadcast %cst_32 : f32 to vector<2x128xf32>
    %66 = arith.addf %65, %64 : vector<2x128xf32>
    %67 = arith.divf %65, %66 : vector<2x128xf32>
    %68 = vector.extract_strided_slice %67 {offsets = [0, 0], sizes = [2, 64], strides = [1, 1]} : vector<2x128xf32> to vector<2x64xf32>
    %69 = vector.extract_strided_slice %67 {offsets = [0, 64], sizes = [2, 64], strides = [1, 1]} : vector<2x128xf32> to vector<2x64xf32>
    %70 = vector.extract_strided_slice %56 {offsets = [0, 128], sizes = [2, 64], strides = [1, 1]} : vector<2x192xf32> to vector<2x64xf32>
    %71 = vector.extract_strided_slice %59 {offsets = [0, 128], sizes = [2, 64], strides = [1, 1]} : vector<2x192xf32> to vector<2x64xf32>
    %72 = arith.mulf %68, %71 : vector<2x64xf32>
    %73 = arith.addf %70, %72 : vector<2x64xf32>
    %74 = math.tanh %73 : vector<2x64xf32>
    %cst_33 = arith.constant 1.000000e+00 : f32
    %75 = vector.broadcast %cst_33 : f32 to vector<2x64xf32>
    %76 = arith.subf %75, %69 : vector<2x64xf32>
    %77 = arith.mulf %76, %74 : vector<2x64xf32>
    %78 = arith.mulf %69, %25 : vector<2x64xf32>
    %79 = arith.addf %77, %78 : vector<2x64xf32>
    %80 = vector.extract_strided_slice %29 {offsets = [2, 0], sizes = [2, 192], strides = [1, 1]} : vector<8x192xf32> to vector<2x192xf32>
    %81 = arith.truncf %53 : vector<2x64xf32> to vector<2x64xbf16>
    %cst_34 = arith.constant dense<0.000000e+00> : vector<2x192xf32>
    %82 = tpu.matmul %81, %10, %cst_34 {dimension_numbers = #tpu.dot_dimension_numbers<[1], [0], [0], [1], [0, 0, 1, 1], [], []>} : vector<2x64xbf16>, vector<64x192xbf16>, vector<2x192xf32> -> vector<2x192xf32>
    %83 = arith.addf %82, %15 : vector<2x192xf32>
    %84 = vector.extract_strided_slice %80 {offsets = [0, 0], sizes = [2, 128], strides = [1, 1]} : vector<2x192xf32> to vector<2x128xf32>
    %85 = vector.extract_strided_slice %83 {offsets = [0, 0], sizes = [2, 128], strides = [1, 1]} : vector<2x192xf32> to vector<2x128xf32>
    %86 = arith.addf %84, %85 : vector<2x128xf32>
    %87 = arith.negf %86 : vector<2x128xf32>
    %88 = math.exp %87 : vector<2x128xf32>
    %cst_35 = arith.constant 1.000000e+00 : f32
    %89 = vector.broadcast %cst_35 : f32 to vector<2x128xf32>
    %90 = arith.addf %89, %88 : vector<2x128xf32>
    %91 = arith.divf %89, %90 : vector<2x128xf32>
    %92 = vector.extract_strided_slice %91 {offsets = [0, 0], sizes = [2, 64], strides = [1, 1]} : vector<2x128xf32> to vector<2x64xf32>
    %93 = vector.extract_strided_slice %91 {offsets = [0, 64], sizes = [2, 64], strides = [1, 1]} : vector<2x128xf32> to vector<2x64xf32>
    %94 = vector.extract_strided_slice %80 {offsets = [0, 128], sizes = [2, 64], strides = [1, 1]} : vector<2x192xf32> to vector<2x64xf32>
    %95 = vector.extract_strided_slice %83 {offsets = [0, 128], sizes = [2, 64], strides = [1, 1]} : vector<2x192xf32> to vector<2x64xf32>
    %96 = arith.mulf %92, %95 : vector<2x64xf32>
    %97 = arith.addf %94, %96 : vector<2x64xf32>
    %98 = math.tanh %97 : vector<2x64xf32>
    %cst_36 = arith.constant 1.000000e+00 : f32
    %99 = vector.broadcast %cst_36 : f32 to vector<2x64xf32>
    %100 = arith.subf %99, %93 : vector<2x64xf32>
    %101 = arith.mulf %100, %98 : vector<2x64xf32>
    %102 = arith.mulf %93, %53 : vector<2x64xf32>
    %103 = arith.addf %101, %102 : vector<2x64xf32>
    %104 = arith.truncf %103 : vector<2x64xf32> to vector<2x64xbf16>
    %cst_37 = arith.constant dense<0.000000e+00> : vector<2x192xf32>
    %105 = tpu.matmul %104, %11, %cst_37 {dimension_numbers = #tpu.dot_dimension_numbers<[1], [0], [0], [1], [0, 0, 1, 1], [], []>} : vector<2x64xbf16>, vector<64x192xbf16>, vector<2x192xf32> -> vector<2x192xf32>
    %106 = arith.addf %105, %18 : vector<2x192xf32>
    %107 = arith.truncf %79 : vector<2x64xf32> to vector<2x64xbf16>
    %cst_38 = arith.constant dense<0.000000e+00> : vector<2x192xf32>
    %108 = tpu.matmul %107, %12, %cst_38 {dimension_numbers = #tpu.dot_dimension_numbers<[1], [0], [0], [1], [0, 0, 1, 1], [], []>} : vector<2x64xbf16>, vector<64x192xbf16>, vector<2x192xf32> -> vector<2x192xf32>
    %109 = arith.addf %108, %21 : vector<2x192xf32>
    %110 = vector.extract_strided_slice %106 {offsets = [0, 0], sizes = [2, 128], strides = [1, 1]} : vector<2x192xf32> to vector<2x128xf32>
    %111 = vector.extract_strided_slice %109 {offsets = [0, 0], sizes = [2, 128], strides = [1, 1]} : vector<2x192xf32> to vector<2x128xf32>
    %112 = arith.addf %110, %111 : vector<2x128xf32>
    %113 = arith.negf %112 : vector<2x128xf32>
    %114 = math.exp %113 : vector<2x128xf32>
    %cst_39 = arith.constant 1.000000e+00 : f32
    %115 = vector.broadcast %cst_39 : f32 to vector<2x128xf32>
    %116 = arith.addf %115, %114 : vector<2x128xf32>
    %117 = arith.divf %115, %116 : vector<2x128xf32>
    %118 = vector.extract_strided_slice %117 {offsets = [0, 0], sizes = [2, 64], strides = [1, 1]} : vector<2x128xf32> to vector<2x64xf32>
    %119 = vector.extract_strided_slice %117 {offsets = [0, 64], sizes = [2, 64], strides = [1, 1]} : vector<2x128xf32> to vector<2x64xf32>
    %120 = vector.extract_strided_slice %106 {offsets = [0, 128], sizes = [2, 64], strides = [1, 1]} : vector<2x192xf32> to vector<2x64xf32>
    %121 = vector.extract_strided_slice %109 {offsets = [0, 128], sizes = [2, 64], strides = [1, 1]} : vector<2x192xf32> to vector<2x64xf32>
    %122 = arith.mulf %118, %121 : vector<2x64xf32>
    %123 = arith.addf %120, %122 : vector<2x64xf32>
    %124 = math.tanh %123 : vector<2x64xf32>
    %cst_40 = arith.constant 1.000000e+00 : f32
    %125 = vector.broadcast %cst_40 : f32 to vector<2x64xf32>
    %126 = arith.subf %125, %119 : vector<2x64xf32>
    %127 = arith.mulf %126, %124 : vector<2x64xf32>
    %128 = arith.mulf %119, %79 : vector<2x64xf32>
    %129 = arith.addf %127, %128 : vector<2x64xf32>
    %130 = vector.extract_strided_slice %29 {offsets = [4, 0], sizes = [2, 192], strides = [1, 1]} : vector<8x192xf32> to vector<2x192xf32>
    %131 = arith.truncf %103 : vector<2x64xf32> to vector<2x64xbf16>
    %cst_41 = arith.constant dense<0.000000e+00> : vector<2x192xf32>
    %132 = tpu.matmul %131, %10, %cst_41 {dimension_numbers = #tpu.dot_dimension_numbers<[1], [0], [0], [1], [0, 0, 1, 1], [], []>} : vector<2x64xbf16>, vector<64x192xbf16>, vector<2x192xf32> -> vector<2x192xf32>
    %133 = arith.addf %132, %15 : vector<2x192xf32>
    %134 = vector.extract_strided_slice %130 {offsets = [0, 0], sizes = [2, 128], strides = [1, 1]} : vector<2x192xf32> to vector<2x128xf32>
    %135 = vector.extract_strided_slice %133 {offsets = [0, 0], sizes = [2, 128], strides = [1, 1]} : vector<2x192xf32> to vector<2x128xf32>
    %136 = arith.addf %134, %135 : vector<2x128xf32>
    %137 = arith.negf %136 : vector<2x128xf32>
    %138 = math.exp %137 : vector<2x128xf32>
    %cst_42 = arith.constant 1.000000e+00 : f32
    %139 = vector.broadcast %cst_42 : f32 to vector<2x128xf32>
    %140 = arith.addf %139, %138 : vector<2x128xf32>
    %141 = arith.divf %139, %140 : vector<2x128xf32>
    %142 = vector.extract_strided_slice %141 {offsets = [0, 0], sizes = [2, 64], strides = [1, 1]} : vector<2x128xf32> to vector<2x64xf32>
    %143 = vector.extract_strided_slice %141 {offsets = [0, 64], sizes = [2, 64], strides = [1, 1]} : vector<2x128xf32> to vector<2x64xf32>
    %144 = vector.extract_strided_slice %130 {offsets = [0, 128], sizes = [2, 64], strides = [1, 1]} : vector<2x192xf32> to vector<2x64xf32>
    %145 = vector.extract_strided_slice %133 {offsets = [0, 128], sizes = [2, 64], strides = [1, 1]} : vector<2x192xf32> to vector<2x64xf32>
    %146 = arith.mulf %142, %145 : vector<2x64xf32>
    %147 = arith.addf %144, %146 : vector<2x64xf32>
    %148 = math.tanh %147 : vector<2x64xf32>
    %cst_43 = arith.constant 1.000000e+00 : f32
    %149 = vector.broadcast %cst_43 : f32 to vector<2x64xf32>
    %150 = arith.subf %149, %143 : vector<2x64xf32>
    %151 = arith.mulf %150, %148 : vector<2x64xf32>
    %152 = arith.mulf %143, %103 : vector<2x64xf32>
    %153 = arith.addf %151, %152 : vector<2x64xf32>
    %154 = arith.truncf %153 : vector<2x64xf32> to vector<2x64xbf16>
    %cst_44 = arith.constant dense<0.000000e+00> : vector<2x192xf32>
    %155 = tpu.matmul %154, %11, %cst_44 {dimension_numbers = #tpu.dot_dimension_numbers<[1], [0], [0], [1], [0, 0, 1, 1], [], []>} : vector<2x64xbf16>, vector<64x192xbf16>, vector<2x192xf32> -> vector<2x192xf32>
    %156 = arith.addf %155, %18 : vector<2x192xf32>
    %157 = arith.truncf %129 : vector<2x64xf32> to vector<2x64xbf16>
    %cst_45 = arith.constant dense<0.000000e+00> : vector<2x192xf32>
    %158 = tpu.matmul %157, %12, %cst_45 {dimension_numbers = #tpu.dot_dimension_numbers<[1], [0], [0], [1], [0, 0, 1, 1], [], []>} : vector<2x64xbf16>, vector<64x192xbf16>, vector<2x192xf32> -> vector<2x192xf32>
    %159 = arith.addf %158, %21 : vector<2x192xf32>
    %160 = vector.extract_strided_slice %156 {offsets = [0, 0], sizes = [2, 128], strides = [1, 1]} : vector<2x192xf32> to vector<2x128xf32>
    %161 = vector.extract_strided_slice %159 {offsets = [0, 0], sizes = [2, 128], strides = [1, 1]} : vector<2x192xf32> to vector<2x128xf32>
    %162 = arith.addf %160, %161 : vector<2x128xf32>
    %163 = arith.negf %162 : vector<2x128xf32>
    %164 = math.exp %163 : vector<2x128xf32>
    %cst_46 = arith.constant 1.000000e+00 : f32
    %165 = vector.broadcast %cst_46 : f32 to vector<2x128xf32>
    %166 = arith.addf %165, %164 : vector<2x128xf32>
    %167 = arith.divf %165, %166 : vector<2x128xf32>
    %168 = vector.extract_strided_slice %167 {offsets = [0, 0], sizes = [2, 64], strides = [1, 1]} : vector<2x128xf32> to vector<2x64xf32>
    %169 = vector.extract_strided_slice %167 {offsets = [0, 64], sizes = [2, 64], strides = [1, 1]} : vector<2x128xf32> to vector<2x64xf32>
    %170 = vector.extract_strided_slice %156 {offsets = [0, 128], sizes = [2, 64], strides = [1, 1]} : vector<2x192xf32> to vector<2x64xf32>
    %171 = vector.extract_strided_slice %159 {offsets = [0, 128], sizes = [2, 64], strides = [1, 1]} : vector<2x192xf32> to vector<2x64xf32>
    %172 = arith.mulf %168, %171 : vector<2x64xf32>
    %173 = arith.addf %170, %172 : vector<2x64xf32>
    %174 = math.tanh %173 : vector<2x64xf32>
    %cst_47 = arith.constant 1.000000e+00 : f32
    %175 = vector.broadcast %cst_47 : f32 to vector<2x64xf32>
    %176 = arith.subf %175, %169 : vector<2x64xf32>
    %177 = arith.mulf %176, %174 : vector<2x64xf32>
    %178 = arith.mulf %169, %129 : vector<2x64xf32>
    %179 = arith.addf %177, %178 : vector<2x64xf32>
    %180 = vector.extract_strided_slice %29 {offsets = [6, 0], sizes = [2, 192], strides = [1, 1]} : vector<8x192xf32> to vector<2x192xf32>
    %181 = arith.truncf %153 : vector<2x64xf32> to vector<2x64xbf16>
    %cst_48 = arith.constant dense<0.000000e+00> : vector<2x192xf32>
    %182 = tpu.matmul %181, %10, %cst_48 {dimension_numbers = #tpu.dot_dimension_numbers<[1], [0], [0], [1], [0, 0, 1, 1], [], []>} : vector<2x64xbf16>, vector<64x192xbf16>, vector<2x192xf32> -> vector<2x192xf32>
    %183 = arith.addf %182, %15 : vector<2x192xf32>
    %184 = vector.extract_strided_slice %180 {offsets = [0, 0], sizes = [2, 128], strides = [1, 1]} : vector<2x192xf32> to vector<2x128xf32>
    %185 = vector.extract_strided_slice %183 {offsets = [0, 0], sizes = [2, 128], strides = [1, 1]} : vector<2x192xf32> to vector<2x128xf32>
    %186 = arith.addf %184, %185 : vector<2x128xf32>
    %187 = arith.negf %186 : vector<2x128xf32>
    %188 = math.exp %187 : vector<2x128xf32>
    %cst_49 = arith.constant 1.000000e+00 : f32
    %189 = vector.broadcast %cst_49 : f32 to vector<2x128xf32>
    %190 = arith.addf %189, %188 : vector<2x128xf32>
    %191 = arith.divf %189, %190 : vector<2x128xf32>
    %192 = vector.extract_strided_slice %191 {offsets = [0, 0], sizes = [2, 64], strides = [1, 1]} : vector<2x128xf32> to vector<2x64xf32>
    %193 = vector.extract_strided_slice %191 {offsets = [0, 64], sizes = [2, 64], strides = [1, 1]} : vector<2x128xf32> to vector<2x64xf32>
    %194 = vector.extract_strided_slice %180 {offsets = [0, 128], sizes = [2, 64], strides = [1, 1]} : vector<2x192xf32> to vector<2x64xf32>
    %195 = vector.extract_strided_slice %183 {offsets = [0, 128], sizes = [2, 64], strides = [1, 1]} : vector<2x192xf32> to vector<2x64xf32>
    %196 = arith.mulf %192, %195 : vector<2x64xf32>
    %197 = arith.addf %194, %196 : vector<2x64xf32>
    %198 = math.tanh %197 : vector<2x64xf32>
    %cst_50 = arith.constant 1.000000e+00 : f32
    %199 = vector.broadcast %cst_50 : f32 to vector<2x64xf32>
    %200 = arith.subf %199, %193 : vector<2x64xf32>
    %201 = arith.mulf %200, %198 : vector<2x64xf32>
    %202 = arith.mulf %193, %153 : vector<2x64xf32>
    %203 = arith.addf %201, %202 : vector<2x64xf32>
    %204 = arith.truncf %203 : vector<2x64xf32> to vector<2x64xbf16>
    %cst_51 = arith.constant dense<0.000000e+00> : vector<2x192xf32>
    %205 = tpu.matmul %204, %11, %cst_51 {dimension_numbers = #tpu.dot_dimension_numbers<[1], [0], [0], [1], [0, 0, 1, 1], [], []>} : vector<2x64xbf16>, vector<64x192xbf16>, vector<2x192xf32> -> vector<2x192xf32>
    %206 = arith.addf %205, %18 : vector<2x192xf32>
    %207 = arith.truncf %179 : vector<2x64xf32> to vector<2x64xbf16>
    %cst_52 = arith.constant dense<0.000000e+00> : vector<2x192xf32>
    %208 = tpu.matmul %207, %12, %cst_52 {dimension_numbers = #tpu.dot_dimension_numbers<[1], [0], [0], [1], [0, 0, 1, 1], [], []>} : vector<2x64xbf16>, vector<64x192xbf16>, vector<2x192xf32> -> vector<2x192xf32>
    %209 = arith.addf %208, %21 : vector<2x192xf32>
    %210 = vector.extract_strided_slice %206 {offsets = [0, 0], sizes = [2, 128], strides = [1, 1]} : vector<2x192xf32> to vector<2x128xf32>
    %211 = vector.extract_strided_slice %209 {offsets = [0, 0], sizes = [2, 128], strides = [1, 1]} : vector<2x192xf32> to vector<2x128xf32>
    %212 = arith.addf %210, %211 : vector<2x128xf32>
    %213 = arith.negf %212 : vector<2x128xf32>
    %214 = math.exp %213 : vector<2x128xf32>
    %cst_53 = arith.constant 1.000000e+00 : f32
    %215 = vector.broadcast %cst_53 : f32 to vector<2x128xf32>
    %216 = arith.addf %215, %214 : vector<2x128xf32>
    %217 = arith.divf %215, %216 : vector<2x128xf32>
    %218 = vector.extract_strided_slice %217 {offsets = [0, 0], sizes = [2, 64], strides = [1, 1]} : vector<2x128xf32> to vector<2x64xf32>
    %219 = vector.extract_strided_slice %217 {offsets = [0, 64], sizes = [2, 64], strides = [1, 1]} : vector<2x128xf32> to vector<2x64xf32>
    %220 = vector.extract_strided_slice %206 {offsets = [0, 128], sizes = [2, 64], strides = [1, 1]} : vector<2x192xf32> to vector<2x64xf32>
    %221 = vector.extract_strided_slice %209 {offsets = [0, 128], sizes = [2, 64], strides = [1, 1]} : vector<2x192xf32> to vector<2x64xf32>
    %222 = arith.mulf %218, %221 : vector<2x64xf32>
    %223 = arith.addf %220, %222 : vector<2x64xf32>
    %224 = math.tanh %223 : vector<2x64xf32>
    %cst_54 = arith.constant 1.000000e+00 : f32
    %225 = vector.broadcast %cst_54 : f32 to vector<2x64xf32>
    %226 = arith.subf %225, %219 : vector<2x64xf32>
    %227 = arith.mulf %226, %224 : vector<2x64xf32>
    %228 = arith.mulf %219, %179 : vector<2x64xf32>
    %229 = arith.addf %227, %228 : vector<2x64xf32>
    %230 = tpu.concatenate %79, %129, %179, %229 in 0 : vector<2x64xf32>, vector<2x64xf32>, vector<2x64xf32>, vector<2x64xf32> -> vector<8x64xf32>
    %231 = arith.index_cast %27 : i32 to index
    %c0_55 = arith.constant 0 : index
    %232 = vector.load %arg15[%231, %c0_55] : memref<16x64xf32, #tpu.memory_space<vmem>>, vector<8x64xf32>
    tpu.vector_store %arg15[%231, %c0_55], %230 {strides = array<i32>} : memref<16x64xf32, #tpu.memory_space<vmem>>, vector<8x64xf32>,
    %c1_i32 = arith.constant 1 : i32
    %c8_i32_56 = arith.constant 8 : i32
    %233 = arith.muli %c1_i32, %c8_i32_56 : i32
    %234 = tpu.assume_multiple %233, 8 : i32
    %235 = arith.index_cast %234 : i32 to index
    %c0_57 = arith.constant 0 : index
    %236 = vector.load %arg14[%235, %c0_57] : memref<16x192xf32, #tpu.memory_space<vmem>>, vector<8x192xf32>
    %237 = vector.extract_strided_slice %236 {offsets = [0, 0], sizes = [2, 192], strides = [1, 1]} : vector<8x192xf32> to vector<2x192xf32>
    %238 = arith.truncf %203 : vector<2x64xf32> to vector<2x64xbf16>
    %cst_58 = arith.constant dense<0.000000e+00> : vector<2x192xf32>
    %239 = tpu.matmul %238, %10, %cst_58 {dimension_numbers = #tpu.dot_dimension_numbers<[1], [0], [0], [1], [0, 0, 1, 1], [], []>} : vector<2x64xbf16>, vector<64x192xbf16>, vector<2x192xf32> -> vector<2x192xf32>
    %240 = arith.addf %239, %15 : vector<2x192xf32>
    %241 = vector.extract_strided_slice %237 {offsets = [0, 0], sizes = [2, 128], strides = [1, 1]} : vector<2x192xf32> to vector<2x128xf32>
    %242 = vector.extract_strided_slice %240 {offsets = [0, 0], sizes = [2, 128], strides = [1, 1]} : vector<2x192xf32> to vector<2x128xf32>
    %243 = arith.addf %241, %242 : vector<2x128xf32>
    %244 = arith.negf %243 : vector<2x128xf32>
    %245 = math.exp %244 : vector<2x128xf32>
    %cst_59 = arith.constant 1.000000e+00 : f32
    %246 = vector.broadcast %cst_59 : f32 to vector<2x128xf32>
    %247 = arith.addf %246, %245 : vector<2x128xf32>
    %248 = arith.divf %246, %247 : vector<2x128xf32>
    %249 = vector.extract_strided_slice %248 {offsets = [0, 0], sizes = [2, 64], strides = [1, 1]} : vector<2x128xf32> to vector<2x64xf32>
    %250 = vector.extract_strided_slice %248 {offsets = [0, 64], sizes = [2, 64], strides = [1, 1]} : vector<2x128xf32> to vector<2x64xf32>
    %251 = vector.extract_strided_slice %237 {offsets = [0, 128], sizes = [2, 64], strides = [1, 1]} : vector<2x192xf32> to vector<2x64xf32>
    %252 = vector.extract_strided_slice %240 {offsets = [0, 128], sizes = [2, 64], strides = [1, 1]} : vector<2x192xf32> to vector<2x64xf32>
    %253 = arith.mulf %249, %252 : vector<2x64xf32>
    %254 = arith.addf %251, %253 : vector<2x64xf32>
    %255 = math.tanh %254 : vector<2x64xf32>
    %cst_60 = arith.constant 1.000000e+00 : f32
    %256 = vector.broadcast %cst_60 : f32 to vector<2x64xf32>
    %257 = arith.subf %256, %250 : vector<2x64xf32>
    %258 = arith.mulf %257, %255 : vector<2x64xf32>
    %259 = arith.mulf %250, %203 : vector<2x64xf32>
    %260 = arith.addf %258, %259 : vector<2x64xf32>
    %261 = arith.truncf %260 : vector<2x64xf32> to vector<2x64xbf16>
    %cst_61 = arith.constant dense<0.000000e+00> : vector<2x192xf32>
    %262 = tpu.matmul %261, %11, %cst_61 {dimension_numbers = #tpu.dot_dimension_numbers<[1], [0], [0], [1], [0, 0, 1, 1], [], []>} : vector<2x64xbf16>, vector<64x192xbf16>, vector<2x192xf32> -> vector<2x192xf32>
    %263 = arith.addf %262, %18 : vector<2x192xf32>
    %264 = arith.truncf %229 : vector<2x64xf32> to vector<2x64xbf16>
    %cst_62 = arith.constant dense<0.000000e+00> : vector<2x192xf32>
    %265 = tpu.matmul %264, %12, %cst_62 {dimension_numbers = #tpu.dot_dimension_numbers<[1], [0], [0], [1], [0, 0, 1, 1], [], []>} : vector<2x64xbf16>, vector<64x192xbf16>, vector<2x192xf32> -> vector<2x192xf32>
    %266 = arith.addf %265, %21 : vector<2x192xf32>
    %267 = vector.extract_strided_slice %263 {offsets = [0, 0], sizes = [2, 128], strides = [1, 1]} : vector<2x192xf32> to vector<2x128xf32>
    %268 = vector.extract_strided_slice %266 {offsets = [0, 0], sizes = [2, 128], strides = [1, 1]} : vector<2x192xf32> to vector<2x128xf32>
    %269 = arith.addf %267, %268 : vector<2x128xf32>
    %270 = arith.negf %269 : vector<2x128xf32>
    %271 = math.exp %270 : vector<2x128xf32>
    %cst_63 = arith.constant 1.000000e+00 : f32
    %272 = vector.broadcast %cst_63 : f32 to vector<2x128xf32>
    %273 = arith.addf %272, %271 : vector<2x128xf32>
    %274 = arith.divf %272, %273 : vector<2x128xf32>
    %275 = vector.extract_strided_slice %274 {offsets = [0, 0], sizes = [2, 64], strides = [1, 1]} : vector<2x128xf32> to vector<2x64xf32>
    %276 = vector.extract_strided_slice %274 {offsets = [0, 64], sizes = [2, 64], strides = [1, 1]} : vector<2x128xf32> to vector<2x64xf32>
    %277 = vector.extract_strided_slice %263 {offsets = [0, 128], sizes = [2, 64], strides = [1, 1]} : vector<2x192xf32> to vector<2x64xf32>
    %278 = vector.extract_strided_slice %266 {offsets = [0, 128], sizes = [2, 64], strides = [1, 1]} : vector<2x192xf32> to vector<2x64xf32>
    %279 = arith.mulf %275, %278 : vector<2x64xf32>
    %280 = arith.addf %277, %279 : vector<2x64xf32>
    %281 = math.tanh %280 : vector<2x64xf32>
    %cst_64 = arith.constant 1.000000e+00 : f32
    %282 = vector.broadcast %cst_64 : f32 to vector<2x64xf32>
    %283 = arith.subf %282, %276 : vector<2x64xf32>
    %284 = arith.mulf %283, %281 : vector<2x64xf32>
    %285 = arith.mulf %276, %229 : vector<2x64xf32>
    %286 = arith.addf %284, %285 : vector<2x64xf32>
    %287 = vector.extract_strided_slice %236 {offsets = [2, 0], sizes = [2, 192], strides = [1, 1]} : vector<8x192xf32> to vector<2x192xf32>
    %288 = arith.truncf %260 : vector<2x64xf32> to vector<2x64xbf16>
    %cst_65 = arith.constant dense<0.000000e+00> : vector<2x192xf32>
    %289 = tpu.matmul %288, %10, %cst_65 {dimension_numbers = #tpu.dot_dimension_numbers<[1], [0], [0], [1], [0, 0, 1, 1], [], []>} : vector<2x64xbf16>, vector<64x192xbf16>, vector<2x192xf32> -> vector<2x192xf32>
    %290 = arith.addf %289, %15 : vector<2x192xf32>
    %291 = vector.extract_strided_slice %287 {offsets = [0, 0], sizes = [2, 128], strides = [1, 1]} : vector<2x192xf32> to vector<2x128xf32>
    %292 = vector.extract_strided_slice %290 {offsets = [0, 0], sizes = [2, 128], strides = [1, 1]} : vector<2x192xf32> to vector<2x128xf32>
    %293 = arith.addf %291, %292 : vector<2x128xf32>
    %294 = arith.negf %293 : vector<2x128xf32>
    %295 = math.exp %294 : vector<2x128xf32>
    %cst_66 = arith.constant 1.000000e+00 : f32
    %296 = vector.broadcast %cst_66 : f32 to vector<2x128xf32>
    %297 = arith.addf %296, %295 : vector<2x128xf32>
    %298 = arith.divf %296, %297 : vector<2x128xf32>
    %299 = vector.extract_strided_slice %298 {offsets = [0, 0], sizes = [2, 64], strides = [1, 1]} : vector<2x128xf32> to vector<2x64xf32>
    %300 = vector.extract_strided_slice %298 {offsets = [0, 64], sizes = [2, 64], strides = [1, 1]} : vector<2x128xf32> to vector<2x64xf32>
    %301 = vector.extract_strided_slice %287 {offsets = [0, 128], sizes = [2, 64], strides = [1, 1]} : vector<2x192xf32> to vector<2x64xf32>
    %302 = vector.extract_strided_slice %290 {offsets = [0, 128], sizes = [2, 64], strides = [1, 1]} : vector<2x192xf32> to vector<2x64xf32>
    %303 = arith.mulf %299, %302 : vector<2x64xf32>
    %304 = arith.addf %301, %303 : vector<2x64xf32>
    %305 = math.tanh %304 : vector<2x64xf32>
    %cst_67 = arith.constant 1.000000e+00 : f32
    %306 = vector.broadcast %cst_67 : f32 to vector<2x64xf32>
    %307 = arith.subf %306, %300 : vector<2x64xf32>
    %308 = arith.mulf %307, %305 : vector<2x64xf32>
    %309 = arith.mulf %300, %260 : vector<2x64xf32>
    %310 = arith.addf %308, %309 : vector<2x64xf32>
    %311 = arith.truncf %310 : vector<2x64xf32> to vector<2x64xbf16>
    %cst_68 = arith.constant dense<0.000000e+00> : vector<2x192xf32>
    %312 = tpu.matmul %311, %11, %cst_68 {dimension_numbers = #tpu.dot_dimension_numbers<[1], [0], [0], [1], [0, 0, 1, 1], [], []>} : vector<2x64xbf16>, vector<64x192xbf16>, vector<2x192xf32> -> vector<2x192xf32>
    %313 = arith.addf %312, %18 : vector<2x192xf32>
    %314 = arith.truncf %286 : vector<2x64xf32> to vector<2x64xbf16>
    %cst_69 = arith.constant dense<0.000000e+00> : vector<2x192xf32>
    %315 = tpu.matmul %314, %12, %cst_69 {dimension_numbers = #tpu.dot_dimension_numbers<[1], [0], [0], [1], [0, 0, 1, 1], [], []>} : vector<2x64xbf16>, vector<64x192xbf16>, vector<2x192xf32> -> vector<2x192xf32>
    %316 = arith.addf %315, %21 : vector<2x192xf32>
    %317 = vector.extract_strided_slice %313 {offsets = [0, 0], sizes = [2, 128], strides = [1, 1]} : vector<2x192xf32> to vector<2x128xf32>
    %318 = vector.extract_strided_slice %316 {offsets = [0, 0], sizes = [2, 128], strides = [1, 1]} : vector<2x192xf32> to vector<2x128xf32>
    %319 = arith.addf %317, %318 : vector<2x128xf32>
    %320 = arith.negf %319 : vector<2x128xf32>
    %321 = math.exp %320 : vector<2x128xf32>
    %cst_70 = arith.constant 1.000000e+00 : f32
    %322 = vector.broadcast %cst_70 : f32 to vector<2x128xf32>
    %323 = arith.addf %322, %321 : vector<2x128xf32>
    %324 = arith.divf %322, %323 : vector<2x128xf32>
    %325 = vector.extract_strided_slice %324 {offsets = [0, 0], sizes = [2, 64], strides = [1, 1]} : vector<2x128xf32> to vector<2x64xf32>
    %326 = vector.extract_strided_slice %324 {offsets = [0, 64], sizes = [2, 64], strides = [1, 1]} : vector<2x128xf32> to vector<2x64xf32>
    %327 = vector.extract_strided_slice %313 {offsets = [0, 128], sizes = [2, 64], strides = [1, 1]} : vector<2x192xf32> to vector<2x64xf32>
    %328 = vector.extract_strided_slice %316 {offsets = [0, 128], sizes = [2, 64], strides = [1, 1]} : vector<2x192xf32> to vector<2x64xf32>
    %329 = arith.mulf %325, %328 : vector<2x64xf32>
    %330 = arith.addf %327, %329 : vector<2x64xf32>
    %331 = math.tanh %330 : vector<2x64xf32>
    %cst_71 = arith.constant 1.000000e+00 : f32
    %332 = vector.broadcast %cst_71 : f32 to vector<2x64xf32>
    %333 = arith.subf %332, %326 : vector<2x64xf32>
    %334 = arith.mulf %333, %331 : vector<2x64xf32>
    %335 = arith.mulf %326, %286 : vector<2x64xf32>
    %336 = arith.addf %334, %335 : vector<2x64xf32>
    %337 = vector.extract_strided_slice %236 {offsets = [4, 0], sizes = [2, 192], strides = [1, 1]} : vector<8x192xf32> to vector<2x192xf32>
    %338 = arith.truncf %310 : vector<2x64xf32> to vector<2x64xbf16>
    %cst_72 = arith.constant dense<0.000000e+00> : vector<2x192xf32>
    %339 = tpu.matmul %338, %10, %cst_72 {dimension_numbers = #tpu.dot_dimension_numbers<[1], [0], [0], [1], [0, 0, 1, 1], [], []>} : vector<2x64xbf16>, vector<64x192xbf16>, vector<2x192xf32> -> vector<2x192xf32>
    %340 = arith.addf %339, %15 : vector<2x192xf32>
    %341 = vector.extract_strided_slice %337 {offsets = [0, 0], sizes = [2, 128], strides = [1, 1]} : vector<2x192xf32> to vector<2x128xf32>
    %342 = vector.extract_strided_slice %340 {offsets = [0, 0], sizes = [2, 128], strides = [1, 1]} : vector<2x192xf32> to vector<2x128xf32>
    %343 = arith.addf %341, %342 : vector<2x128xf32>
    %344 = arith.negf %343 : vector<2x128xf32>
    %345 = math.exp %344 : vector<2x128xf32>
    %cst_73 = arith.constant 1.000000e+00 : f32
    %346 = vector.broadcast %cst_73 : f32 to vector<2x128xf32>
    %347 = arith.addf %346, %345 : vector<2x128xf32>
    %348 = arith.divf %346, %347 : vector<2x128xf32>
    %349 = vector.extract_strided_slice %348 {offsets = [0, 0], sizes = [2, 64], strides = [1, 1]} : vector<2x128xf32> to vector<2x64xf32>
    %350 = vector.extract_strided_slice %348 {offsets = [0, 64], sizes = [2, 64], strides = [1, 1]} : vector<2x128xf32> to vector<2x64xf32>
    %351 = vector.extract_strided_slice %337 {offsets = [0, 128], sizes = [2, 64], strides = [1, 1]} : vector<2x192xf32> to vector<2x64xf32>
    %352 = vector.extract_strided_slice %340 {offsets = [0, 128], sizes = [2, 64], strides = [1, 1]} : vector<2x192xf32> to vector<2x64xf32>
    %353 = arith.mulf %349, %352 : vector<2x64xf32>
    %354 = arith.addf %351, %353 : vector<2x64xf32>
    %355 = math.tanh %354 : vector<2x64xf32>
    %cst_74 = arith.constant 1.000000e+00 : f32
    %356 = vector.broadcast %cst_74 : f32 to vector<2x64xf32>
    %357 = arith.subf %356, %350 : vector<2x64xf32>
    %358 = arith.mulf %357, %355 : vector<2x64xf32>
    %359 = arith.mulf %350, %310 : vector<2x64xf32>
    %360 = arith.addf %358, %359 : vector<2x64xf32>
    %361 = arith.truncf %360 : vector<2x64xf32> to vector<2x64xbf16>
    %cst_75 = arith.constant dense<0.000000e+00> : vector<2x192xf32>
    %362 = tpu.matmul %361, %11, %cst_75 {dimension_numbers = #tpu.dot_dimension_numbers<[1], [0], [0], [1], [0, 0, 1, 1], [], []>} : vector<2x64xbf16>, vector<64x192xbf16>, vector<2x192xf32> -> vector<2x192xf32>
    %363 = arith.addf %362, %18 : vector<2x192xf32>
    %364 = arith.truncf %336 : vector<2x64xf32> to vector<2x64xbf16>
    %cst_76 = arith.constant dense<0.000000e+00> : vector<2x192xf32>
    %365 = tpu.matmul %364, %12, %cst_76 {dimension_numbers = #tpu.dot_dimension_numbers<[1], [0], [0], [1], [0, 0, 1, 1], [], []>} : vector<2x64xbf16>, vector<64x192xbf16>, vector<2x192xf32> -> vector<2x192xf32>
    %366 = arith.addf %365, %21 : vector<2x192xf32>
    %367 = vector.extract_strided_slice %363 {offsets = [0, 0], sizes = [2, 128], strides = [1, 1]} : vector<2x192xf32> to vector<2x128xf32>
    %368 = vector.extract_strided_slice %366 {offsets = [0, 0], sizes = [2, 128], strides = [1, 1]} : vector<2x192xf32> to vector<2x128xf32>
    %369 = arith.addf %367, %368 : vector<2x128xf32>
    %370 = arith.negf %369 : vector<2x128xf32>
    %371 = math.exp %370 : vector<2x128xf32>
    %cst_77 = arith.constant 1.000000e+00 : f32
    %372 = vector.broadcast %cst_77 : f32 to vector<2x128xf32>
    %373 = arith.addf %372, %371 : vector<2x128xf32>
    %374 = arith.divf %372, %373 : vector<2x128xf32>
    %375 = vector.extract_strided_slice %374 {offsets = [0, 0], sizes = [2, 64], strides = [1, 1]} : vector<2x128xf32> to vector<2x64xf32>
    %376 = vector.extract_strided_slice %374 {offsets = [0, 64], sizes = [2, 64], strides = [1, 1]} : vector<2x128xf32> to vector<2x64xf32>
    %377 = vector.extract_strided_slice %363 {offsets = [0, 128], sizes = [2, 64], strides = [1, 1]} : vector<2x192xf32> to vector<2x64xf32>
    %378 = vector.extract_strided_slice %366 {offsets = [0, 128], sizes = [2, 64], strides = [1, 1]} : vector<2x192xf32> to vector<2x64xf32>
    %379 = arith.mulf %375, %378 : vector<2x64xf32>
    %380 = arith.addf %377, %379 : vector<2x64xf32>
    %381 = math.tanh %380 : vector<2x64xf32>
    %cst_78 = arith.constant 1.000000e+00 : f32
    %382 = vector.broadcast %cst_78 : f32 to vector<2x64xf32>
    %383 = arith.subf %382, %376 : vector<2x64xf32>
    %384 = arith.mulf %383, %381 : vector<2x64xf32>
    %385 = arith.mulf %376, %336 : vector<2x64xf32>
    %386 = arith.addf %384, %385 : vector<2x64xf32>
    %387 = vector.extract_strided_slice %236 {offsets = [6, 0], sizes = [2, 192], strides = [1, 1]} : vector<8x192xf32> to vector<2x192xf32>
    %388 = arith.truncf %360 : vector<2x64xf32> to vector<2x64xbf16>
    %cst_79 = arith.constant dense<0.000000e+00> : vector<2x192xf32>
    %389 = tpu.matmul %388, %10, %cst_79 {dimension_numbers = #tpu.dot_dimension_numbers<[1], [0], [0], [1], [0, 0, 1, 1], [], []>} : vector<2x64xbf16>, vector<64x192xbf16>, vector<2x192xf32> -> vector<2x192xf32>
    %390 = arith.addf %389, %15 : vector<2x192xf32>
    %391 = vector.extract_strided_slice %387 {offsets = [0, 0], sizes = [2, 128], strides = [1, 1]} : vector<2x192xf32> to vector<2x128xf32>
    %392 = vector.extract_strided_slice %390 {offsets = [0, 0], sizes = [2, 128], strides = [1, 1]} : vector<2x192xf32> to vector<2x128xf32>
    %393 = arith.addf %391, %392 : vector<2x128xf32>
    %394 = arith.negf %393 : vector<2x128xf32>
    %395 = math.exp %394 : vector<2x128xf32>
    %cst_80 = arith.constant 1.000000e+00 : f32
    %396 = vector.broadcast %cst_80 : f32 to vector<2x128xf32>
    %397 = arith.addf %396, %395 : vector<2x128xf32>
    %398 = arith.divf %396, %397 : vector<2x128xf32>
    %399 = vector.extract_strided_slice %398 {offsets = [0, 0], sizes = [2, 64], strides = [1, 1]} : vector<2x128xf32> to vector<2x64xf32>
    %400 = vector.extract_strided_slice %398 {offsets = [0, 64], sizes = [2, 64], strides = [1, 1]} : vector<2x128xf32> to vector<2x64xf32>
    %401 = vector.extract_strided_slice %387 {offsets = [0, 128], sizes = [2, 64], strides = [1, 1]} : vector<2x192xf32> to vector<2x64xf32>
    %402 = vector.extract_strided_slice %390 {offsets = [0, 128], sizes = [2, 64], strides = [1, 1]} : vector<2x192xf32> to vector<2x64xf32>
    %403 = arith.mulf %399, %402 : vector<2x64xf32>
    %404 = arith.addf %401, %403 : vector<2x64xf32>
    %405 = math.tanh %404 : vector<2x64xf32>
    %cst_81 = arith.constant 1.000000e+00 : f32
    %406 = vector.broadcast %cst_81 : f32 to vector<2x64xf32>
    %407 = arith.subf %406, %400 : vector<2x64xf32>
    %408 = arith.mulf %407, %405 : vector<2x64xf32>
    %409 = arith.mulf %400, %360 : vector<2x64xf32>
    %410 = arith.addf %408, %409 : vector<2x64xf32>
    %411 = arith.truncf %410 : vector<2x64xf32> to vector<2x64xbf16>
    %cst_82 = arith.constant dense<0.000000e+00> : vector<2x192xf32>
    %412 = tpu.matmul %411, %11, %cst_82 {dimension_numbers = #tpu.dot_dimension_numbers<[1], [0], [0], [1], [0, 0, 1, 1], [], []>} : vector<2x64xbf16>, vector<64x192xbf16>, vector<2x192xf32> -> vector<2x192xf32>
    %413 = arith.addf %412, %18 : vector<2x192xf32>
    %414 = arith.truncf %386 : vector<2x64xf32> to vector<2x64xbf16>
    %cst_83 = arith.constant dense<0.000000e+00> : vector<2x192xf32>
    %415 = tpu.matmul %414, %12, %cst_83 {dimension_numbers = #tpu.dot_dimension_numbers<[1], [0], [0], [1], [0, 0, 1, 1], [], []>} : vector<2x64xbf16>, vector<64x192xbf16>, vector<2x192xf32> -> vector<2x192xf32>
    %416 = arith.addf %415, %21 : vector<2x192xf32>
    %417 = vector.extract_strided_slice %413 {offsets = [0, 0], sizes = [2, 128], strides = [1, 1]} : vector<2x192xf32> to vector<2x128xf32>
    %418 = vector.extract_strided_slice %416 {offsets = [0, 0], sizes = [2, 128], strides = [1, 1]} : vector<2x192xf32> to vector<2x128xf32>
    %419 = arith.addf %417, %418 : vector<2x128xf32>
    %420 = arith.negf %419 : vector<2x128xf32>
    %421 = math.exp %420 : vector<2x128xf32>
    %cst_84 = arith.constant 1.000000e+00 : f32
    %422 = vector.broadcast %cst_84 : f32 to vector<2x128xf32>
    %423 = arith.addf %422, %421 : vector<2x128xf32>
    %424 = arith.divf %422, %423 : vector<2x128xf32>
    %425 = vector.extract_strided_slice %424 {offsets = [0, 0], sizes = [2, 64], strides = [1, 1]} : vector<2x128xf32> to vector<2x64xf32>
    %426 = vector.extract_strided_slice %424 {offsets = [0, 64], sizes = [2, 64], strides = [1, 1]} : vector<2x128xf32> to vector<2x64xf32>
    %427 = vector.extract_strided_slice %413 {offsets = [0, 128], sizes = [2, 64], strides = [1, 1]} : vector<2x192xf32> to vector<2x64xf32>
    %428 = vector.extract_strided_slice %416 {offsets = [0, 128], sizes = [2, 64], strides = [1, 1]} : vector<2x192xf32> to vector<2x64xf32>
    %429 = arith.mulf %425, %428 : vector<2x64xf32>
    %430 = arith.addf %427, %429 : vector<2x64xf32>
    %431 = math.tanh %430 : vector<2x64xf32>
    %cst_85 = arith.constant 1.000000e+00 : f32
    %432 = vector.broadcast %cst_85 : f32 to vector<2x64xf32>
    %433 = arith.subf %432, %426 : vector<2x64xf32>
    %434 = arith.mulf %433, %431 : vector<2x64xf32>
    %435 = arith.mulf %426, %386 : vector<2x64xf32>
    %436 = arith.addf %434, %435 : vector<2x64xf32>
    %437 = tpu.concatenate %286, %336, %386, %436 in 0 : vector<2x64xf32>, vector<2x64xf32>, vector<2x64xf32>, vector<2x64xf32> -> vector<8x64xf32>
    %438 = arith.index_cast %234 : i32 to index
    %c0_86 = arith.constant 0 : index
    %439 = vector.load %arg15[%438, %c0_86] : memref<16x64xf32, #tpu.memory_space<vmem>>, vector<8x64xf32>
    tpu.vector_store %arg15[%438, %c0_86], %437 {strides = array<i32>} : memref<16x64xf32, #tpu.memory_space<vmem>>, vector<8x64xf32>,
    %c2_i32 = arith.constant 2 : i32
    %c0_87 = arith.constant 0 : index
    %c0_88 = arith.constant 0 : index
    %c0_89 = arith.constant 0 : index
    %440 = vector.load %arg13[%c0_87, %c0_88, %c0_89] : memref<2x2x64xf32, #tpu.memory_space<vmem>>, vector<1x2x64xf32>
    %441 = vector.shape_cast %440 : vector<1x2x64xf32> to vector<2x64xf32>
    %442 = vector.shape_cast %410 : vector<2x64xf32> to vector<1x2x64xf32>
    tpu.vector_store %arg13[%c0_87, %c0_88, %c0_89], %442 {strides = array<i32>} : memref<2x2x64xf32, #tpu.memory_space<vmem>>, vector<1x2x64xf32>,
    %c1_90 = arith.constant 1 : index
    %c0_91 = arith.constant 0 : index
    %c0_92 = arith.constant 0 : index
    %443 = vector.load %arg13[%c1_90, %c0_91, %c0_92] : memref<2x2x64xf32, #tpu.memory_space<vmem>>, vector<1x2x64xf32>
    %444 = vector.shape_cast %443 : vector<1x2x64xf32> to vector<2x64xf32>
    %445 = vector.shape_cast %436 : vector<2x64xf32> to vector<1x2x64xf32>
    tpu.vector_store %arg13[%c1_90, %c0_91, %c0_92], %445 {strides = array<i32>} : memref<2x2x64xf32, #tpu.memory_space<vmem>>, vector<1x2x64xf32>,
    %c0_93 = arith.constant 0 : index
    %c0_94 = arith.constant 0 : index
    %446 = vector.load %arg15[%c0_93, %c0_94] : memref<16x64xf32, #tpu.memory_space<vmem>>, vector<16x64xf32>
    %447 = arith.truncf %446 : vector<16x64xf32> to vector<16x64xbf16>
    %c0_95 = arith.constant 0 : index
    %c0_96 = arith.constant 0 : index
    %448 = vector.load %arg10[%c0_95, %c0_96] : memref<64x128xbf16, #tpu.memory_space<vmem>>, vector<64x128xbf16>
    %cst_97 = arith.constant dense<0.000000e+00> : vector<16x128xf32>
    %449 = tpu.matmul %447, %448, %cst_97 {dimension_numbers = #tpu.dot_dimension_numbers<[1], [0], [0], [1], [0, 0, 1, 1], [], []>} : vector<16x64xbf16>, vector<64x128xbf16>, vector<16x128xf32> -> vector<16x128xf32>
    %c0_98 = arith.constant 0 : index
    %c0_99 = arith.constant 0 : index
    %450 = vector.load %arg11[%c0_98, %c0_99] : memref<1x128xf32, #tpu.memory_space<vmem>>, vector<1x128xf32>
    %451 = vector.broadcast %450 : vector<1x128xf32> to vector<16x128xf32>
    %452 = arith.addf %449, %451 : vector<16x128xf32>
    %c0_100 = arith.constant 0 : index
    %c0_101 = arith.constant 0 : index
    %453 = vector.load %arg12[%c0_100, %c0_101] : memref<16x128xf32, #tpu.memory_space<vmem>>, vector<16x128xf32>
    tpu.vector_store %arg12[%c0_100, %c0_101], %452 {strides = array<i32>} : memref<16x128xf32, #tpu.memory_space<vmem>>, vector<16x128xf32>,
    return
  }
  func.func @transform_0(%arg0: i32) -> (i32, i32) {
    %c0_i32 = arith.constant 0 : i32
    %c0_i32_0 = arith.constant 0 : i32
    return %arg0, %c0_i32 : i32, i32
  }
  func.func @transform_1(%arg0: i32) -> (i32, i32) {
    %c0_i32 = arith.constant 0 : i32
    %c0_i32_0 = arith.constant 0 : i32
    %c0_i32_1 = arith.constant 0 : i32
    return %c0_i32, %c0_i32_0 : i32, i32
  }
  func.func @transform_2(%arg0: i32) -> (i32, i32) {
    %c0_i32 = arith.constant 0 : i32
    %c0_i32_0 = arith.constant 0 : i32
    %c0_i32_1 = arith.constant 0 : i32
    return %c0_i32, %c0_i32_0 : i32, i32
  }
  func.func @transform_3(%arg0: i32) -> (i32, i32) {
    %c0_i32 = arith.constant 0 : i32
    %c0_i32_0 = arith.constant 0 : i32
    %c0_i32_1 = arith.constant 0 : i32
    return %c0_i32, %c0_i32_0 : i32, i32
  }
  func.func @transform_4(%arg0: i32) -> (i32, i32) {
    %c0_i32 = arith.constant 0 : i32
    %c0_i32_0 = arith.constant 0 : i32
    %c0_i32_1 = arith.constant 0 : i32
    return %c0_i32, %c0_i32_0 : i32, i32
  }
  func.func @transform_5(%arg0: i32) -> (i32, i32) {
    %c0_i32 = arith.constant 0 : i32
    %c0_i32_0 = arith.constant 0 : i32
    %c0_i32_1 = arith.constant 0 : i32
    return %c0_i32, %c0_i32_0 : i32, i32
  }
  func.func @transform_6(%arg0: i32) -> (i32, i32) {
    %c0_i32 = arith.constant 0 : i32
    %c0_i32_0 = arith.constant 0 : i32
    %c0_i32_1 = arith.constant 0 : i32
    return %c0_i32, %c0_i32_0 : i32, i32
  }
  func.func @transform_7(%arg0: i32) -> (i32, i32) {
    %c0_i32 = arith.constant 0 : i32
    %c0_i32_0 = arith.constant 0 : i32
    %c0_i32_1 = arith.constant 0 : i32
    return %c0_i32, %c0_i32_0 : i32, i32
  }
  func.func @transform_8(%arg0: i32) -> (i32, i32) {
    %c0_i32 = arith.constant 0 : i32
    %c0_i32_0 = arith.constant 0 : i32
    %c0_i32_1 = arith.constant 0 : i32
    return %c0_i32, %c0_i32_0 : i32, i32
  }
  func.func @transform_9(%arg0: i32) -> (i32, i32) {
    %c0_i32 = arith.constant 0 : i32
    %c0_i32_0 = arith.constant 0 : i32
    %c0_i32_1 = arith.constant 0 : i32
    return %c0_i32, %c0_i32_0 : i32, i32
  }
  func.func @transform_10(%arg0: i32) -> (i32, i32) {
    %c0_i32 = arith.constant 0 : i32
    %c0_i32_0 = arith.constant 0 : i32
    %c0_i32_1 = arith.constant 0 : i32
    return %c0_i32, %c0_i32_0 : i32, i32
  }
  func.func @transform_11(%arg0: i32) -> (i32, i32) {
    %c0_i32 = arith.constant 0 : i32
    %c0_i32_0 = arith.constant 0 : i32
    return %arg0, %c0_i32 : i32, i32
  }
}

</mosaic_0001>

<bundles_post_ra>
// kernel: tpu_custom_call.1
= control target key start
LH: loop header
LB: loop body
LE: loop exit
PB: predicated region body
PF: predicated region fallthrough
CT: control target
= control target key end

     0   :  { %16 = vsyncpa [#allocation6], 0  ;;  %s3366_s0 = inlined_call_operand.hbm [shape: bf16[16,64], index: 0, kind: input, shape index: {}]   ;;  %s3367_s1 = inlined_call_operand.hbm [shape: bf16[64,192], index: 1, kind: input, shape index: {}]   ;;  %s3368_s2 = inlined_call_operand.hbm [shape: bf16[64,192], index: 2, kind: input, shape index: {}]   ;;  %s3369_s3 = inlined_call_operand.hbm [shape: bf16[64,192], index: 3, kind: input, shape index: {}]   ;;  %s3370_s4 = inlined_call_operand.hbm [shape: bf16[64,192], index: 4, kind: input, shape index: {}]   ;;  %s3371_s5 = inlined_call_operand.vmem [shape: f32[1,192], index: 5, kind: input, shape index: {}]   ;;  %s3372_s6 = inlined_call_operand.hbm [shape: f32[1,192], index: 6, kind: input, shape index: {}]   ;;  %s3373_s7 = inlined_call_operand.hbm [shape: f32[1,192], index: 7, kind: input, shape index: {}]   ;;  %s3374_s8 = inlined_call_operand.hbm [shape: f32[1,192], index: 8, kind: input, shape index: {}]   ;;  %s3375_s9 = inlined_call_operand.vmem [shape: bf16[64,128], index: 9, kind: input, shape index: {}]   ;;  %s3376_s10 = inlined_call_operand.vmem [shape: f32[1,128], index: 10, kind: input, shape index: {}]   ;;  %s3377_s11 = inlined_call_operand.hbm [shape: f32[16,128], index: 11, kind: output, shape index: {}]  }
   0x1   :  { %17 = vsyncpa [#allocation9], 0 }
   0x2   :  { %18 = vsyncpa [#allocation12], 0 }
   0x3   :  { %19 = vsyncpa [#allocation15], 0 }
   0x4   :  { %20 = vsyncpa [#allocation18], 0 }
   0x5   :  { %21 = vsyncpa [#allocation7], 0  ;;  %s2573_s17 = smov [#allocation8]   ;;  %s2363_s21 = scalar_lea.hbm %s3367_s1, 1024 }
   0x6   :  { %s39_s18 = sshll.u32 %s2573_s17, 4  ;;  %p2364_p0 = scmp.ne.s32.totalorder %s3367_s1, %s2363_s21  ;;  %s40_s18 = int_to_ptr.vmem [resolvable:$true] %s39_s18 }
   0x7   :  { %p2367_p1 = scmp.lt.u32.totalorder %s2363_s21, %s3367_s1 }
   0x9   :  { %p2369_p2 = pnand %p2367_p1, %p2364_p0 }
   0xb   :  { %2372 = shalt.err (!%p2369_p2)
}
   0xc   :  { %s2373_s26 = scalar_lea.vmem %s40_s18, 1024  ;;  %p2378_p4 = scmp.lt.s32.totalorder %s40_s18, %s40_s18 }
   0xd   :  { %p2374_p3 = scmp.ne.s32.totalorder %s40_s18, %s2373_s26  ;;  %p2379_p5 = scmp.lt.s32.totalorder %s2373_s26, %s2373_s26 }
   0xf   :  { %p2380_p6 = por %p2379_p5, %p2378_p4 }
  0x11   :  { %p2381_p7 = pnand %p2380_p6, %p2374_p3 }
  0x13   :  { %2384 = shalt.err (!%p2381_p7)
}
  0x14   :  { %s2574_s27 = smov 128   ;;  %s2575_s28 = smov 8  }
  0x15   :  { %45 = dma.hbm_to_vmem [thread:$0]  %s3367_s1, 1024, %s40_s18, [#allocation9], %s2574_s27, %s2574_s27, %s2575_s28  }
  0x16   :  { %s2576_s12 = smov [#allocation11]   ;;  %s2577_s14 = smov [#allocation14]  }
  0x17   :  { %s63_s13 = sshll.u32 %s2576_s12, 4  ;;  %s90_s15 = sshll.u32 %s2577_s14, 4  ;;  %s64_s13 = int_to_ptr.vmem [resolvable:$true] %s63_s13  ;;  %s91_s15 = int_to_ptr.vmem [resolvable:$true] %s90_s15 }
  0x18   :  { %s2385_s19 = scalar_lea.hbm %s3369_s3, 1024 }
  0x19   :  { %p2386_p8 = scmp.ne.s32.totalorder %s3369_s3, %s2385_s19  ;;  %p2389_p9 = scmp.lt.u32.totalorder %s2385_s19, %s3369_s3 }
  0x1b   :  { %p2391_p10 = pnand %p2389_p9, %p2386_p8 }
  0x1d   :  { %2394 = shalt.err (!%p2391_p10)
}
  0x1e   :  { %s2395_s1 = scalar_lea.vmem %s64_s13, 1024  ;;  %p2400_p12 = scmp.lt.s32.totalorder %s64_s13, %s64_s13 }
  0x1f   :  { %p2396_p11 = scmp.ne.s32.totalorder %s64_s13, %s2395_s1  ;;  %p2401_p13 = scmp.lt.s32.totalorder %s2395_s1, %s2395_s1 }
  0x21   :  { %p2402_p0 = por %p2401_p13, %p2400_p12 }
  0x23   :  { %p2403_p1 = pnand %p2402_p0, %p2396_p11 }
  0x25   :  { %2406 = shalt.err (!%p2403_p1)
}
  0x26   :  { %69 = dma.hbm_to_vmem [thread:$0]  %s3369_s3, 1024, %s64_s13, [#allocation12], %s2574_s27, %s2574_s27, %s2575_s28  }
  0x27   :  { %s2407_s29 = scalar_lea.hbm %s3372_s6, 32 }
  0x28   :  { %p2408_p2 = scmp.ne.s32.totalorder %s3372_s6, %s2407_s29  ;;  %p2411_p3 = scmp.lt.u32.totalorder %s2407_s29, %s3372_s6 }
  0x2a   :  { %p2413_p4 = pnand %p2411_p3, %p2408_p2 }
  0x2c   :  { %2416 = shalt.err (!%p2413_p4)
}
  0x2d   :  { %s2417_s17 = scalar_lea.vmem %s91_s15, 32  ;;  %p2422_p6 = scmp.lt.s32.totalorder %s91_s15, %s91_s15 }
  0x2e   :  { %p2418_p5 = scmp.ne.s32.totalorder %s91_s15, %s2417_s17  ;;  %p2423_p7 = scmp.lt.s32.totalorder %s2417_s17, %s2417_s17 }
  0x30   :  { %p2424_p8 = por %p2423_p7, %p2422_p6 }
  0x32   :  { %p2425_p9 = pnand %p2424_p8, %p2418_p5 }
  0x34   :  { %2428 = shalt.err (!%p2425_p9)
}
  0x35   :  { %93 = dma.hbm_to_vmem [thread:$0]  %s3372_s6, 32, %s91_s15, [#allocation15]  }
  0x36   :  { %s2578_s19 = smov [#allocation5]   ;;  %s2429_s23 = scalar_lea.hbm %s3366_s0, 128 }
  0x37   :  { %s27_s20 = sshll.u32 %s2578_s19, 4  ;;  %p2430_p10 = scmp.ne.s32.totalorder %s3366_s0, %s2429_s23  ;;  %s28_s20 = int_to_ptr.vmem [resolvable:$true] %s27_s20 }
  0x38   :  { %p2433_p11 = scmp.lt.u32.totalorder %s2429_s23, %s3366_s0 }
  0x3a   :  { %p2435_p12 = pnand %p2433_p11, %p2430_p10 }
  0x3c   :  { %2438 = shalt.err (!%p2435_p12)
}
  0x3d   :  { %s2439_s26 = scalar_lea.vmem %s28_s20, 128  ;;  %p2444_p0 = scmp.lt.s32.totalorder %s28_s20, %s28_s20 }
  0x3e   :  { %p2440_p13 = scmp.ne.s32.totalorder %s28_s20, %s2439_s26  ;;  %p2445_p1 = scmp.lt.s32.totalorder %s2439_s26, %s2439_s26 }
  0x40   :  { %p2446_p2 = por %p2445_p1, %p2444_p0 }
  0x42   :  { %p2447_p3 = pnand %p2446_p2, %p2440_p13 }
  0x44   :  { %2450 = shalt.err (!%p2447_p3)
}
  0x45   :  { %s2579_s6 = smov 64   ;;  %s2580_s15 = smov 4  }
  0x46   :  { %33 = dma.hbm_to_vmem [thread:$0]  %s3366_s0, 128, %s28_s20, [#allocation6], %s2579_s6, %s2579_s6, %s2580_s15  }
  0x47   :  { %s2581_s12 = smov [#allocation10]   ;;  %s2582_s16 = smov [#allocation13]  }
  0x48   :  { %s51_s14 = sshll.u32 %s2581_s12, 4  ;;  %s75_s17 = sshll.u32 %s2582_s16, 4  ;;  %s52_s14 = int_to_ptr.vmem [resolvable:$true] %s51_s14  ;;  %s2705_s17 = int_to_ptr.vmem [resolvable:$true] %s75_s17 }
  0x49   :  { %s2451_s19 = scalar_lea.hbm %s3368_s2, 1024 }
  0x4a   :  { %p2452_p4 = scmp.ne.s32.totalorder %s3368_s2, %s2451_s19  ;;  %p2455_p5 = scmp.lt.u32.totalorder %s2451_s19, %s3368_s2 }
  0x4c   :  { %p2457_p6 = pnand %p2455_p5, %p2452_p4 }
  0x4e   :  { %2460 = shalt.err (!%p2457_p6)
}
  0x4f   :  { %s2461_s0 = scalar_lea.vmem %s52_s14, 1024  ;;  %p2466_p8 = scmp.lt.s32.totalorder %s52_s14, %s52_s14 }
  0x50   :  { %p2462_p7 = scmp.ne.s32.totalorder %s52_s14, %s2461_s0  ;;  %p2467_p9 = scmp.lt.s32.totalorder %s2461_s0, %s2461_s0 }
  0x52   :  { %p2468_p10 = por %p2467_p9, %p2466_p8 }
  0x54   :  { %p2469_p11 = pnand %p2468_p10, %p2462_p7 }
  0x56   :  { %2472 = shalt.err (!%p2469_p11)
}
  0x57   :  { %57 = dma.hbm_to_vmem [thread:$0]  %s3368_s2, 1024, %s52_s14, [#allocation9], %s2574_s27, %s2574_s27, %s2575_s28  }
  0x58   :  { %s2473_s26 = scalar_lea.hbm %s3370_s4, 1024 }
  0x59   :  { %p2474_p12 = scmp.ne.s32.totalorder %s3370_s4, %s2473_s26  ;;  %p2477_p13 = scmp.lt.u32.totalorder %s2473_s26, %s3370_s4 }
  0x5b   :  { %p2479_p0 = pnand %p2477_p13, %p2474_p12 }
  0x5d   :  { %2482 = shalt.err (!%p2479_p0)
}
  0x5e   :  { %s2483_s16 = scalar_lea.vmem %s2705_s17, 1024  ;;  %p2488_p2 = scmp.lt.s32.totalorder %s2705_s17, %s2705_s17 }
  0x5f   :  { %p2484_p1 = scmp.ne.s32.totalorder %s2705_s17, %s2483_s16  ;;  %p2489_p3 = scmp.lt.s32.totalorder %s2483_s16, %s2483_s16 }
  0x61   :  { %p2490_p4 = por %p2489_p3, %p2488_p2 }
  0x63   :  { %p2491_p5 = pnand %p2490_p4, %p2484_p1 }
  0x65   :  { %2494 = shalt.err (!%p2491_p5)
}
  0x66   :  { %81 = dma.hbm_to_vmem [thread:$0]  %s3370_s4, 1024, %s2705_s17, [#allocation12], %s2574_s27, %s2574_s27, %s2575_s28  }
  0x67   :  { %s2583_s3 = smov [#allocation16]   ;;  %s2584_s19 = smov [#allocation17]  }
  0x68   :  { %s100_s13 = sshll.u32 %s2583_s3, 4  ;;  %s110_s21 = sshll.u32 %s2584_s19, 4  ;;  %s101_s13 = int_to_ptr.vmem [resolvable:$true] %s100_s13  ;;  %s111_s21 = int_to_ptr.vmem [resolvable:$true] %s110_s21 }
  0x69   :  { %s2495_s1 = scalar_lea.hbm %s3373_s7, 32 }
  0x6a   :  { %p2496_p6 = scmp.ne.s32.totalorder %s3373_s7, %s2495_s1  ;;  %p2499_p7 = scmp.lt.u32.totalorder %s2495_s1, %s3373_s7 }
  0x6c   :  { %p2501_p8 = pnand %p2499_p7, %p2496_p6 }
  0x6e   :  { %2504 = shalt.err (!%p2501_p8)
}
  0x6f   :  { %s2505_s4 = scalar_lea.vmem %s101_s13, 32  ;;  %p2510_p10 = scmp.lt.s32.totalorder %s101_s13, %s101_s13 }
  0x70   :  { %p2506_p9 = scmp.ne.s32.totalorder %s101_s13, %s2505_s4  ;;  %p2511_p11 = scmp.lt.s32.totalorder %s2505_s4, %s2505_s4 }
  0x72   :  { %p2512_p12 = por %p2511_p11, %p2510_p10 }
  0x74   :  { %p2513_p13 = pnand %p2512_p12, %p2506_p9 }
  0x76   :  { %2516 = shalt.err (!%p2513_p13)
}
  0x77   :  { %103 = dma.hbm_to_vmem [thread:$0]  %s3373_s7, 32, %s101_s13, [#allocation15]  }
  0x78   :  { %s2517_s29 = scalar_lea.hbm %s3374_s8, 32 }
  0x79   :  { %p2518_p0 = scmp.ne.s32.totalorder %s3374_s8, %s2517_s29  ;;  %p2521_p1 = scmp.lt.u32.totalorder %s2517_s29, %s3374_s8 }
  0x7b   :  { %p2523_p2 = pnand %p2521_p1, %p2518_p0 }
  0x7d   :  { %2526 = shalt.err (!%p2523_p2)
}
  0x7e   :  { %s2527_s14 = scalar_lea.vmem %s111_s21, 32  ;;  %p2532_p4 = scmp.lt.s32.totalorder %s111_s21, %s111_s21 }
  0x7f   :  { %p2528_p3 = scmp.ne.s32.totalorder %s111_s21, %s2527_s14  ;;  %p2533_p5 = scmp.lt.s32.totalorder %s2527_s14, %s2527_s14 }
  0x81   :  { %p2534_p6 = por %p2533_p5, %p2532_p4 }
  0x83   :  { %p2535_p7 = pnand %p2534_p6, %p2528_p3 }
  0x85   :  { %2538 = shalt.err (!%p2535_p7)
}
  0x86   :  { %113 = dma.hbm_to_vmem [thread:$0]  %s3374_s8, 32, %s111_s21, [#allocation18]  }
  0x87   :  { %2561 = dma.done.wait [#allocation6], 128  }
  0x88   :  { %2562 = vsyncadd [#allocation6], 4294967168 }
  0x89   :  { %2563 = dma.done.wait [#allocation9], 2048  }
  0x8a   :  { %2564 = vsyncadd [#allocation9], 4294965248 }
  0x8b   :  { %2565 = dma.done.wait [#allocation12], 2048  }
  0x8c   :  { %2566 = vsyncadd [#allocation12], 4294965248 }
  0x8d   :  { %2567 = dma.done.wait [#allocation15], 64  }
  0x8e   :  { %2568 = vsyncadd [#allocation15], 4294967232 }
  0x8f   :  { %2569 = dma.done.wait [#allocation18], 32  }
  0x90   :  { %2570 = vsyncadd [#allocation18], 4294967264  ;;  %vm147_vm0 = vcmask 517120   ;;  %v2585_v0 = vmov 0   ;;  %v2586_v1 = vmov 0.0   ;;  %v2210_v17 = vld [vmem:[#allocation5] sm:$0xff]   ;;  %v162_v21 = vlaneseq }
  0x91   :  { %253 = vmatprep.mubr.bf16.mxu0 %v2585_v0  ;;  %412 = vmatprep.mubr.bf16.mxu1 %v2585_v0  ;;  %148 = vst.msk [vmem:[#allocation2] sm:$0x3] %vm147_vm0, %v2586_v1  ;;  %149 = vst.msk [vmem:[#allocation2 + $0x2] sm:$0x3] %vm147_vm0, %v2586_v1  ;;  %v2189_v2 = vld [vmem:[#allocation8 + $0x4] ss:$8 sps:$4 sm:$0xff]  }
  0x92   :  { %v2191_v3 = vld [vmem:[#allocation8] ss:$8 sps:$4 sm:$0xff]   ;;  %221 = vmatprep.subr.bf16.mxu0 %v2189_v2  ;;  %v2192_v4 = vld [vmem:[#allocation8 + $0x14] ss:$8 sps:$4 sm:$0xff]   ;;  %v2194_v5 = vld [vmem:[#allocation8 + $0x10] ss:$8 sps:$4 sm:$0xff]  }
  0x93   :  { %222 = vmatpush1.bf16.msra.mxu0 %v2191_v3  ;;  %v2772_v6 = vld [vmem:[#allocation10 + $0x4] ss:$8 sps:$4 sm:$0xff]   ;;  %v2774_v7 = vld [vmem:[#allocation10] ss:$8 sps:$4 sm:$0xff]   ;;  %v2778_v9 = vld [vmem:[#allocation10 + $0x14] ss:$8 sps:$4 sm:$0xff]  }
  0x94   :  { %223 = vmatprep.subr.bf16.mxu0 %v2192_v4  ;;  %v2198_v8 = vld [vmem:[#allocation8 + $0x24] ss:$8 sps:$4 sm:$0xff]   ;;  %380 = vmatprep.subr.bf16.mxu1 %v2772_v6  ;;  %v2780_v10 = vld [vmem:[#allocation10 + $0x10] ss:$8 sps:$4 sm:$0xff]   ;;  %v2200_v11 = vld [vmem:[#allocation8 + $0x20] ss:$8 sps:$4 sm:$0xff]  }
  0x95   :  { %381 = vmatpush1.bf16.msra.mxu1 %v2774_v7  ;;  %v2204_v12 = vld [vmem:[#allocation8 + $0x34] ss:$8 sps:$4 sm:$0xff]   ;;  %v2783_v13 = vld [vmem:[#allocation10 + $0x24] ss:$8 sps:$4 sm:$0xff]   ;;  %v2786_v14 = vld [vmem:[#allocation10 + $0x20] ss:$8 sps:$4 sm:$0xff]  }
  0x96   :  { %382 = vmatprep.subr.bf16.mxu1 %v2778_v9  ;;  %v2206_v15 = vld [vmem:[#allocation8 + $0x30] ss:$8 sps:$4 sm:$0xff]   ;;  %v2789_v16 = vld [vmem:[#allocation10 + $0x34] ss:$8 sps:$4 sm:$0xff]   ;;  %vm217_vm1 = vcmask 523264   ;;  %v163_v22 = vshrl.u32 %v162_v21, 7 }
  0x97   :  { %224 = vmatpush1.bf16.msra.mxu0 %v2194_v5  ;;  %v2791_v18 = vld [vmem:[#allocation10 + $0x30] ss:$8 sps:$4 sm:$0xff]   ;;  %v160_v24 = vld [vmem:[%s3371_s5] sm:$0x3]  ;;  %v292_v27 = vld [vmem:[#allocation14] sm:$0x3] }
  0x98   :  { %225 = vmatprep.subr.bf16.mxu0 %v2198_v8  ;;  %v2793_v19 = vld [vmem:[#allocation2] sm:$0x3]  ;;  %v2804_v23 = vsub.s32 0, %v163_v22  ;;  %v2809_v25 = vsub.s32 1, %v163_v22  ;;  %v2834_v54 = vld [vmem:[#allocation11] ss:$8 sps:$4 sm:$0xff]  }
  0x99   :  { %383 = vmatpush1.bf16.msra.mxu1 %v2780_v10  ;;  %v336_v20 = vpack.c.bf16 %v2793_v19, %v2793_v19  ;;  %v2832_v53 = vld [vmem:[#allocation11 + $0x4] ss:$8 sps:$4 sm:$0xff]   ;;  %v2838_v56 = vld [vmem:[#allocation13] ss:$8 sps:$4 sm:$0xff]   ;;  %v2840_v57 = vld [vmem:[#allocation11 + $0x14] ss:$8 sps:$4 sm:$0xff]  }
  0x9a   :  { %384 = vmatprep.subr.bf16.mxu1 %v2783_v13  ;;  %v165_v26 = vrot.slane %v160_v24, %v2804_v23  ;;  %v169_v28 = vrot.slane %v160_v24, %v2809_v25  ;;  %v2814_v30 = vrot.slane %v292_v27, %v2804_v23  ;;  %v2826_v47 = vrot.slane %v292_v27, %v2809_v25  ;;  %v2836_v55 = vld [vmem:[#allocation13 + $0x4] ss:$8 sps:$4 sm:$0xff]   ;;  %v2844_v59 = vld [vmem:[#allocation13 + $0x14] ss:$8 sps:$4 sm:$0xff]   ;;  %v2848_v60 = vld [vmem:[#allocation11 + $0x10] ss:$8 sps:$4 sm:$0xff]  }
  0x9b   :  { %226 = vmatpush1.bf16.msra.mxu0 %v2200_v11  ;;  %v2852_v61 = vld [vmem:[#allocation13 + $0x10] ss:$8 sps:$4 sm:$0xff]   ;;  %v2854_v62 = vld [vmem:[#allocation11 + $0x24] ss:$8 sps:$4 sm:$0xff]   ;;  %v2862_v2 = vld [vmem:[#allocation11 + $0x20] ss:$8 sps:$4 sm:$0xff]  }
  0x9c   :  { %227 = vmatprep.subr.bf16.mxu0 %v2204_v12  ;;  %v2857_v63 = vld [vmem:[#allocation13 + $0x24] ss:$8 sps:$4 sm:$0xff]   ;;  %v2866_v3 = vld [vmem:[#allocation13 + $0x20] ss:$8 sps:$4 sm:$0xff]   ;;  %v2868_v4 = vld [vmem:[#allocation11 + $0x34] ss:$8 sps:$4 sm:$0xff]  }
  0x9d   :  { %385 = vmatpush1.bf16.msra.mxu1 %v2786_v14  ;;  %v2871_v5 = vld [vmem:[#allocation13 + $0x34] ss:$8 sps:$4 sm:$0xff]   ;;  %v2874_v8 = vld [vmem:[#allocation11 + $0x30] ss:$8 sps:$4 sm:$0xff]   ;;  %v2885_v12 = vld [vmem:[#allocation2 + $0x2] sm:$0x3] }
  0x9e   :  { %386 = vmatprep.subr.bf16.mxu1 %v2789_v16  ;;  %v2878_v11 = vld [vmem:[#allocation13 + $0x30] ss:$8 sps:$4 sm:$0xff]   ;;  %vm1196_vm2 = vcmask 1041408   ;;  %vm1198_vm3 = vcmask 1043456   ;;  %vm1200_vm4 = vcmask 1045504   ;;  %vm1959_vm5 = vcmask 523270  }
  0x9f   :  { %228 = vmatpush1.bf16.msra.mxu0 %v2206_v15  ;;  %v531_v15 = vpack.c.bf16 %v2885_v12, %v2885_v12  ;;  %vm2587_vm6 = vmmov 0   ;;  %s2588_s24 = smov [#allocation19]  }
  0xa0   :  { %490 = vmatprep.subr.bf16.mxu0 %v2832_v53  ;;  %s2059_s4 = sshll.u32 %s2588_s24, 4  ;;  %s2060_s4 = int_to_ptr.vmem [resolvable:$true] %s2059_s4 }
  0xa1   :  { %387 = vmatpush1.bf16.msra.mxu1 %v2791_v18  ;;  %p2544_p9 = scmp.lt.s32.totalorder %s2060_s4, %s2060_s4 }
  0xa2   :  { %2085 = vmatmul.mubr.msk.bf16.vlgmr.msra.gmra.mrb[0].mxu0 %vm217_vm1, %v2210_v17  ;;  %575 = vmatprep.subr.bf16.mxu1 %v2836_v55 }
  0xa3   :  { %522 = vmatprep.mubr.bf16.mxu0 %v2585_v0  ;;  %491 = vmatpush1.bf16.msra.mxu0 %v2834_v54 }
  0xa4   :  { %2094 = vmatmul.mubr.msk.bf16.vlgmr.msra.gmra.mrb[0].mxu1 %vm217_vm1, %v336_v20  ;;  %492 = vmatprep.subr.bf16.mxu0 %v2840_v57 }
  0xa5   :  { %607 = vmatprep.mubr.bf16.mxu1 %v2585_v0  ;;  %576 = vmatpush1.bf16.msra.mxu1 %v2838_v56 }
  0xa6   :  { %577 = vmatprep.subr.bf16.mxu1 %v2844_v59 }
  0xa7   :  { %493 = vmatpush1.bf16.msra.mxu0 %v2848_v60 }
  0xa8   :  { %494 = vmatprep.subr.bf16.mxu0 %v2854_v62 }
  0xa9   :  { %578 = vmatpush1.bf16.msra.mxu1 %v2852_v61 }
  0xaa   :  { %579 = vmatprep.subr.bf16.mxu1 %v2857_v63 }
  0xab   :  { %495 = vmatpush1.bf16.msra.mxu0 %v2862_v2 }
  0xac   :  { %496 = vmatprep.subr.bf16.mxu0 %v2868_v4 }
  0xad   :  { %580 = vmatpush1.bf16.msra.mxu1 %v2866_v3 }
  0xae   :  { %581 = vmatprep.subr.bf16.mxu1 %v2871_v5 }
  0xaf   :  { %497 = vmatpush1.bf16.msra.mxu0 %v2874_v8 }
  0xb0   :  { %638 = vmatprep.subr.bf16.mxu0 %v2772_v6 }
  0xb1   :  { %582 = vmatpush1.bf16.msra.mxu1 %v2878_v11 }
  0xb2   :  { %714 = vmatprep.subr.bf16.mxu1 %v2832_v53 }
  0xb4   :  { %2113 = vmatmul.mubr.msk.bf16.vlgmr.msra.gmra.mrb[4].mxu1 %vm217_vm1, %v531_v15 }
  0xb5   :  { %715 = vmatpush1.bf16.msra.mxu1 %v2834_v54  ;;  %746 = vmatprep.mubr.bf16.mxu1 %v2585_v0 }
  0xb6   :  { %716 = vmatprep.subr.bf16.mxu1 %v2840_v57 }
  0xb9   :  { %717 = vmatpush1.bf16.msra.mxu1 %v2848_v60 }
  0xba   :  { %718 = vmatprep.subr.bf16.mxu1 %v2854_v62 }
  0xbd   :  { %719 = vmatpush1.bf16.msra.mxu1 %v2862_v2 }
  0xbe   :  { %720 = vmatprep.subr.bf16.mxu1 %v2868_v4 }
  0xc1   :  { %721 = vmatpush1.bf16.msra.mxu1 %v2874_v8 }
  0xc2   :  { %821 = vmatprep.subr.bf16.mxu1 %v2772_v6 }
 0x175   :  { %v255_v29 = vpop.f32.mrb[0].mxu0 }
 0x176   :  { %v2816_v31 = vadd.f32 %v255_v29, %v165_v26  ;;  %v257_v32 = vpop.f32.mrb[1].mxu0 }
 0x177   :  { %v258_v33 = vadd.f32 %v257_v32, %v169_v28  ;;  %v259_v34 = vpop.f32.mrb[2].mxu0  ;;  %v414_v37 = vpop.f32.mrb[0].mxu1 }
 0x178   :  { %v2818_v35 = vadd.f32 %v259_v34, %v165_v26  ;;  %v261_v36 = vpop.f32.mrb[3].mxu0  ;;  %v415_v39 = vadd.f32 %v414_v37, %v2814_v30  ;;  %v416_v40 = vpop.f32.mrb[1].mxu1  ;;  %v316_v34 = vld [vmem:[#allocation17] sm:$0x3] }
 0x179   :  { %265 = vst.msk [vmem:[#allocation3 + $0x8] sm:$0xff] %vm217_vm1, %v258_v33  ;;  %v262_v38 = vadd.f32 %v261_v36, %v169_v28  ;;  %v418_v41 = vpop.f32.mrb[2].mxu1  ;;  %v417_v48 = vadd.f32 %v416_v40, %v2826_v47  ;;  %v304_v36 = vld [vmem:[#allocation16] sm:$0x3]  ;;  %v2925_v37 = vrot.slane %v316_v34, %v2804_v23 }
 0x17a   :  { %266 = vst [vmem:[#allocation3 + $0x10] sm:$0xff] %v2818_v35  ;;  %v421_v42 = vadd.f32 %v415_v39, %v2816_v31  ;;  %v419_v43 = vpop.f32.mrb[3].mxu1 }
 0x17b   :  { %267 = vst.msk [vmem:[#allocation3 + $0x18] sm:$0xff] %vm217_vm1, %v262_v38  ;;  %v2928_v38 = vrot.slane %v304_v36, %v2804_v23 }
 0x17c   :  { %v2095_v44 = vmul.f32 -1.442695, %v421_v42 }
 0x17e   :  { %2242 = vpow2.f32 %v2095_v44 }
 0x180   :  { %v2829_v51 = vld [vmem:[#allocation3 + $0x8] sm:$0xff] }
 0x187   :  { %v609_v28 = vpop.f32.mrb[4].mxu1 }
 0x188   :  { %v2243_v45 = vpop.eup %2242  ;;  %v611_v29 = vpop.f32.mrb[5].mxu1  ;;  %v610_v39 = vadd.f32 %v609_v28, %v2925_v37 }
 0x189   :  { %v425_v46 = vadd.f32 1.0, %v2243_v45  ;;  %v613_v32 = vpop.f32.mrb[6].mxu1 }
 0x18a   :  { %v614_v33 = vpop.f32.mrb[7].mxu1 }
 0x18b   :  { %2244 = vrcp.f32 %v425_v46 }
 0x195   :  { %v2245_v49 = vpop.eup %2244 }
 0x196   :  { %v428_v50 = vmul.f32 %v2245_v49, %v417_v48 }
 0x198   :  { %v429_v52 = vadd.f32 %v428_v50, %v2829_v51 }
 0x19a   :  { %2246 = vtanh.f32 %v429_v52 }
 0x1a4   :  { %v2247_v58 = vpop.eup %2246 }
 0x1a5   :  { %433 = vrot.lane.b32.xlu0 %v2247_v58, %s2579_s6 }
 0x1a9   :  { %438 = vrot.lane.b32.xlu0 %v2793_v19, %s2579_s6  ;;  %v431_v19 = vsub.f32 1.0, %v2245_v49 }
 0x217   :  { %v434_v17 = vpop.permute.xlu0 %433 }
 0x218   :  { %v436_v21 = vmul.f32 %v434_v17, %v431_v19 }
 0x21b   :  { %v439_v20 = vpop.permute.xlu0 %438 }
 0x21c   :  { %v441_v22 = vmul.f32 %v2245_v49, %v439_v20  ;;  %v2935_v20 = vrot.slane %v316_v34, %v2809_v25 }
 0x21e   :  { %v2895_v24 = vadd.f32 %v441_v22, %v436_v21  ;;  %v2938_v22 = vrot.slane %v304_v36, %v2809_v25 }
 0x220   :  { %v443_v26 = vpack.c.bf16 %v2895_v24, %v2895_v24  ;;  %v702_v34 = vrot.slane %v2895_v24, 6 }
 0x222   :  { %445 = vrot.lane.b32.xlu1 %v443_v26, %s2579_s6  ;;  %v612_v26 = vadd.f32 %v611_v29, %v2935_v20 }
 0x294   :  { %v446_v27 = vpop.permute.xlu1 %445 }
 0x295   :  { %2104 = vmatmul.mubr.msk.bf16.vlgmr.msra.gmra.mrb[4].mxu0 %vm217_vm1, %v446_v27 }
 0x296   :  { %639 = vmatpush1.bf16.msra.mxu0 %v2774_v7  ;;  %670 = vmatprep.mubr.bf16.mxu0 %v2585_v0 }
 0x297   :  { %640 = vmatprep.subr.bf16.mxu0 %v2778_v9 }
 0x29a   :  { %641 = vmatpush1.bf16.msra.mxu0 %v2780_v10 }
 0x29b   :  { %642 = vmatprep.subr.bf16.mxu0 %v2783_v13 }
 0x29e   :  { %643 = vmatpush1.bf16.msra.mxu0 %v2786_v14 }
 0x29f   :  { %644 = vmatprep.subr.bf16.mxu0 %v2789_v16 }
 0x2a2   :  { %645 = vmatpush1.bf16.msra.mxu0 %v2791_v18 }
 0x2a3   :  { %762 = vmatprep.subr.bf16.mxu0 %v2836_v55 }
 0x2a5   :  { %2115 = vmatmul.mubr.msk.bf16.vlgmr.msra.gmra.mrb[8].mxu0 %vm217_vm1, %v446_v27 }
 0x2a6   :  { %763 = vmatpush1.bf16.msra.mxu0 %v2838_v56  ;;  %794 = vmatprep.mubr.bf16.mxu0 %v2585_v0 }
 0x2a7   :  { %764 = vmatprep.subr.bf16.mxu0 %v2844_v59 }
 0x2aa   :  { %765 = vmatpush1.bf16.msra.mxu0 %v2852_v61 }
 0x2ab   :  { %766 = vmatprep.subr.bf16.mxu0 %v2857_v63 }
 0x2ae   :  { %767 = vmatpush1.bf16.msra.mxu0 %v2866_v3 }
 0x2af   :  { %768 = vmatprep.subr.bf16.mxu0 %v2871_v5 }
 0x2b2   :  { %769 = vmatpush1.bf16.msra.mxu0 %v2878_v11 }
 0x2b3   :  { %897 = vmatprep.subr.bf16.mxu0 %v2832_v53 }
 0x368   :  { %v524_v40 = vpop.f32.mrb[4].mxu0 }
 0x369   :  { %v525_v41 = vadd.f32 %v524_v40, %v2928_v38  ;;  %v526_v42 = vpop.f32.mrb[5].mxu0 }
 0x36a   :  { %v528_v43 = vpop.f32.mrb[6].mxu0  ;;  %v527_v28 = vadd.f32 %v526_v42, %v2938_v22 }
 0x36b   :  { %v616_v44 = vadd.f32 %v610_v39, %v525_v41  ;;  %v529_v45 = vpop.f32.mrb[7].mxu0 }
 0x36d   :  { %v2114_v46 = vmul.f32 -1.442695, %v616_v44 }
 0x36f   :  { %2248 = vpow2.f32 %v2114_v46 }
 0x378   :  { %v672_v48 = vpop.f32.mrb[8].mxu0 }
 0x379   :  { %v2249_v49 = vpop.eup %2248  ;;  %v673_v50 = vadd.f32 %v672_v48, %v2814_v30  ;;  %v674_v52 = vpop.f32.mrb[9].mxu0 }
 0x37a   :  { %v620_v58 = vadd.f32 1.0, %v2249_v49  ;;  %v676_v15 = vpop.f32.mrb[10].mxu0  ;;  %v675_v41 = vadd.f32 %v674_v52, %v2826_v47 }
 0x37b   :  { %v680_v23 = vrot.slane %v673_v50, 6  ;;  %v677_v17 = vpop.f32.mrb[11].mxu0 }
 0x37c   :  { %2250 = vrcp.f32 %v620_v58  ;;  %v690_v43 = vrot.slane %v675_v41, 6 }
 0x37d   :  { %v682_v19 = vadd.f32 %v680_v23, %v2816_v31 }
 0x37f   :  { %v2116_v21 = vmul.f32 -1.442695, %v682_v19 }
 0x381   :  { %2252 = vpow2.f32 %v2116_v21 }
 0x386   :  { %v2251_v27 = vpop.eup %2250 }
 0x387   :  { %v623_v32 = vmul.f32 %v2251_v27, %v612_v26  ;;  %v626_v23 = vsub.f32 1.0, %v2251_v27 }
 0x389   :  { %v624_v33 = vadd.f32 %v623_v32, %v527_v28 }
 0x38b   :  { %v2253_v39 = vpop.eup %2252 }
 0x38c   :  { %v686_v40 = vadd.f32 1.0, %v2253_v39 }
 0x38e   :  { %2254 = vrcp.f32 %v686_v40 }
 0x398   :  { %v2255_v44 = vpop.eup %2254 }
 0x399   :  { %v692_v45 = vmul.f32 %v2255_v44, %v690_v43  ;;  %v704_v46 = vmul.f32 %v2255_v44, %v702_v34  ;;  %v695_v42 = vsub.f32 1.0, %v2255_v44 }
 0x39b   :  { %v693_v25 = vadd.f32 %v692_v45, %v2829_v51 }
 0x39d   :  { %2256 = vtanh.f32 %v693_v25 }
 0x39e   :  { %2258 = vtanh.f32 %v624_v33 }
 0x3a7   :  { %v2257_v29 = vpop.eup %2256 }
 0x3a8   :  { %697 = vrot.lane.b32.xlu1 %v2257_v29, %s2579_s6  ;;  %v2259_v36 = vpop.eup %2258 }
 0x3ac   :  { %628 = vrot.lane.b32.xlu1 %v2259_v36, %s2579_s6 }
 0x41a   :  { %v698_v48 = vpop.permute.xlu1 %697 }
 0x41b   :  { %v700_v49 = vmul.f32 %v698_v48, %v695_v42 }
 0x41d   :  { %v2947_v50 = vadd.f32 %v704_v46, %v700_v49 }
 0x41e   :  { %v629_v15 = vpop.permute.xlu1 %628 }
 0x41f   :  { %v706_v24 = vpack.c.bf16 %v2947_v50, %v2947_v50  ;;  %v631_v19 = vmul.f32 %v629_v15, %v626_v23  ;;  %v885_v48 = vrot.slane %v2947_v50, 6 }
 0x421   :  { %v708_v52 = vrot.slane %v706_v24, 1 }
 0x423   :  { %709 = vrot.lane.b32.xlu0 %v708_v52, %s2579_s6 }
 0x427   :  { %633 = vrot.lane.b32.xlu0 %v2885_v12, %s2579_s6 }
 0x495   :  { %v710_v58 = vpop.permute.xlu0 %709 }
 0x496   :  { %2117 = vmatmul.mubr.msk.bf16.vlgmr.msra.gmra.mrb[8].mxu1 %vm217_vm1, %v710_v58 }
 0x497   :  { %822 = vmatpush1.bf16.msra.mxu1 %v2774_v7  ;;  %853 = vmatprep.mubr.bf16.mxu1 %v2585_v0 }
 0x498   :  { %823 = vmatprep.subr.bf16.mxu1 %v2778_v9 }
 0x499   :  { %v634_v17 = vpop.permute.xlu0 %633 }
 0x49a   :  { %v636_v21 = vmul.f32 %v2251_v27, %v634_v17 }
 0x49b   :  { %824 = vmatpush1.bf16.msra.mxu1 %v2780_v10 }
 0x49c   :  { %v2959_v26 = vadd.f32 %v636_v21, %v631_v19  ;;  %825 = vmatprep.subr.bf16.mxu1 %v2783_v13 }
 0x49e   :  { %v755_v12 = vpack.c.bf16 %v2959_v26, %v2959_v26 }
 0x49f   :  { %826 = vmatpush1.bf16.msra.mxu1 %v2786_v14 }
 0x4a0   :  { %757 = vrot.lane.b32.xlu1 %v755_v12, %s2579_s6  ;;  %827 = vmatprep.subr.bf16.mxu1 %v2789_v16 }
 0x4a3   :  { %828 = vmatpush1.bf16.msra.mxu1 %v2791_v18 }
 0x4a4   :  { %945 = vmatprep.subr.bf16.mxu1 %v2836_v55 }
 0x4a6   :  { %2120 = vmatmul.mubr.msk.bf16.vlgmr.msra.gmra.mrb[12].mxu1 %vm217_vm1, %v710_v58 }
 0x4a7   :  { %946 = vmatpush1.bf16.msra.mxu1 %v2838_v56  ;;  %977 = vmatprep.mubr.bf16.mxu1 %v2585_v0 }
 0x4a8   :  { %947 = vmatprep.subr.bf16.mxu1 %v2844_v59 }
 0x4ab   :  { %948 = vmatpush1.bf16.msra.mxu1 %v2852_v61 }
 0x4ac   :  { %949 = vmatprep.subr.bf16.mxu1 %v2857_v63 }
 0x4af   :  { %950 = vmatpush1.bf16.msra.mxu1 %v2866_v3 }
 0x4b0   :  { %951 = vmatprep.subr.bf16.mxu1 %v2871_v5 }
 0x4b3   :  { %952 = vmatpush1.bf16.msra.mxu1 %v2878_v11 }
 0x4b4   :  { %1080 = vmatprep.subr.bf16.mxu1 %v2832_v53 }
 0x512   :  { %v758_v27 = vpop.permute.xlu1 %757 }
 0x513   :  { %2118 = vmatmul.mubr.msk.bf16.vlgmr.msra.gmra.mrb[12].mxu0 %vm217_vm1, %v758_v27 }
 0x514   :  { %898 = vmatpush1.bf16.msra.mxu0 %v2834_v54  ;;  %929 = vmatprep.mubr.bf16.mxu0 %v2585_v0 }
 0x515   :  { %899 = vmatprep.subr.bf16.mxu0 %v2840_v57 }
 0x518   :  { %900 = vmatpush1.bf16.msra.mxu0 %v2848_v60 }
 0x519   :  { %901 = vmatprep.subr.bf16.mxu0 %v2854_v62 }
 0x51c   :  { %902 = vmatpush1.bf16.msra.mxu0 %v2862_v2 }
 0x51d   :  { %903 = vmatprep.subr.bf16.mxu0 %v2868_v4 }
 0x520   :  { %904 = vmatpush1.bf16.msra.mxu0 %v2874_v8 }
 0x521   :  { %1004 = vmatprep.subr.bf16.mxu0 %v2772_v6 }
 0x569   :  { %v748_v28 = vpop.f32.mrb[8].mxu1 }
 0x56a   :  { %v750_v32 = vpop.f32.mrb[9].mxu1  ;;  %v749_v19 = vadd.f32 %v748_v28, %v2928_v38 }
 0x56b   :  { %v752_v33 = vpop.f32.mrb[10].mxu1 }
 0x56c   :  { %v753_v39 = vpop.f32.mrb[11].mxu1 }
 0x579   :  { %v855_v40 = vpop.f32.mrb[12].mxu1 }
 0x57a   :  { %v856_v41 = vadd.f32 %v855_v40, %v2814_v30  ;;  %v857_v34 = vpop.f32.mrb[13].mxu1 }
 0x57b   :  { %v859_v43 = vpop.f32.mrb[14].mxu1  ;;  %v858_v42 = vadd.f32 %v857_v34, %v2826_v47 }
 0x57c   :  { %v863_v44 = vrot.slane %v856_v41, 4  ;;  %v860_v45 = vpop.f32.mrb[15].mxu1 }
 0x57d   :  { %v873_v49 = vrot.slane %v858_v42, 4 }
 0x57e   :  { %v865_v46 = vadd.f32 %v863_v44, %v2816_v31  ;;  %v751_v44 = vadd.f32 %v750_v32, %v2938_v22 }
 0x580   :  { %v2121_v25 = vmul.f32 -1.442695, %v865_v46 }
 0x582   :  { %2260 = vpow2.f32 %v2121_v25 }
 0x58c   :  { %v2261_v29 = vpop.eup %2260 }
 0x58d   :  { %v869_v36 = vadd.f32 1.0, %v2261_v29 }
 0x58f   :  { %2262 = vrcp.f32 %v869_v36 }
 0x599   :  { %v2263_v24 = vpop.eup %2262 }
 0x59a   :  { %v875_v52 = vmul.f32 %v2263_v24, %v873_v49  ;;  %v887_v58 = vmul.f32 %v2263_v24, %v885_v48  ;;  %v878_v25 = vsub.f32 1.0, %v2263_v24 }
 0x59c   :  { %v876_v15 = vadd.f32 %v875_v52, %v2829_v51 }
 0x59e   :  { %2264 = vtanh.f32 %v876_v15 }
 0x5a8   :  { %v2265_v23 = vpop.eup %2264 }
 0x5a9   :  { %880 = vrot.lane.b32.xlu0 %v2265_v23, %s2579_s6 }
 0x5e6   :  { %v796_v17 = vpop.f32.mrb[12].mxu0 }
 0x5e7   :  { %v797_v21 = vadd.f32 %v796_v17, %v2925_v37  ;;  %v798_v12 = vpop.f32.mrb[13].mxu0 }
 0x5e8   :  { %v800_v27 = vpop.f32.mrb[14].mxu0  ;;  %v799_v34 = vadd.f32 %v798_v12, %v2935_v20 }
 0x5e9   :  { %v803_v33 = vadd.f32 %v797_v21, %v749_v19  ;;  %v801_v39 = vpop.f32.mrb[15].mxu0 }
 0x5eb   :  { %v2119_v50 = vmul.f32 -1.442695, %v803_v33 }
 0x5ed   :  { %2266 = vpow2.f32 %v2119_v50 }
 0x5f7   :  { %v2267_v40 = vpop.eup %2266 }
 0x5f8   :  { %v807_v41 = vadd.f32 1.0, %v2267_v40 }
 0x5fa   :  { %2268 = vrcp.f32 %v807_v41 }
 0x604   :  { %v2269_v43 = vpop.eup %2268 }
 0x605   :  { %v810_v45 = vmul.f32 %v2269_v43, %v799_v34  ;;  %v813_v52 = vsub.f32 1.0, %v2269_v43  ;;  %v819_v32 = vmul.f32 %v2269_v43, %v2959_v26 }
 0x607   :  { %v811_v46 = vadd.f32 %v810_v45, %v751_v44 }
 0x609   :  { %2270 = vtanh.f32 %v811_v46 }
 0x613   :  { %v2271_v28 = vpop.eup %2270 }
 0x614   :  { %815 = vrot.lane.b32.xlu0 %v2271_v28, %s2579_s6 }
 0x61b   :  { %v881_v29 = vpop.permute.xlu0 %880 }
 0x61c   :  { %v883_v36 = vmul.f32 %v881_v29, %v878_v25 }
 0x61e   :  { %v3000_v42 = vadd.f32 %v887_v58, %v883_v36 }
 0x620   :  { %v889_v48 = vpack.c.bf16 %v3000_v42, %v3000_v42  ;;  %v1068_v29 = vrot.slane %v3000_v42, 6 }
 0x622   :  { %v891_v49 = vrot.slane %v889_v48, 2 }
 0x624   :  { %892 = vrot.lane.b32.xlu1 %v891_v49, %s2579_s6 }
 0x686   :  { %v816_v15 = vpop.permute.xlu0 %815 }
 0x687   :  { %v818_v23 = vmul.f32 %v816_v15, %v813_v52 }
 0x689   :  { %v3006_v17 = vadd.f32 %v819_v32, %v818_v23 }
 0x68b   :  { %v938_v24 = vpack.c.bf16 %v3006_v17, %v3006_v17 }
 0x68d   :  { %940 = vrot.lane.b32.xlu1 %v938_v24, %s2579_s6 }
 0x696   :  { %v893_v58 = vpop.permute.xlu1 %892 }
 0x697   :  { %2122 = vmatmul.mubr.msk.bf16.vlgmr.msra.gmra.mrb[16].mxu0 %vm217_vm1, %v893_v58 }
 0x698   :  { %1005 = vmatpush1.bf16.msra.mxu0 %v2774_v7  ;;  %1036 = vmatprep.mubr.bf16.mxu0 %v2585_v0 }
 0x699   :  { %1006 = vmatprep.subr.bf16.mxu0 %v2778_v9 }
 0x69c   :  { %1007 = vmatpush1.bf16.msra.mxu0 %v2780_v10 }
 0x69d   :  { %1008 = vmatprep.subr.bf16.mxu0 %v2783_v13 }
 0x6a0   :  { %1009 = vmatpush1.bf16.msra.mxu0 %v2786_v14 }
 0x6a1   :  { %1010 = vmatprep.subr.bf16.mxu0 %v2789_v16 }
 0x6a4   :  { %1011 = vmatpush1.bf16.msra.mxu0 %v2791_v18 }
 0x6a5   :  { %1128 = vmatprep.subr.bf16.mxu0 %v2836_v55 }
 0x6a7   :  { %2125 = vmatmul.mubr.msk.bf16.vlgmr.msra.gmra.mrb[20].mxu0 %vm217_vm1, %v893_v58 }
 0x6a8   :  { %1129 = vmatpush1.bf16.msra.mxu0 %v2838_v56  ;;  %1160 = vmatprep.mubr.bf16.mxu0 %v2585_v0 }
 0x6a9   :  { %1130 = vmatprep.subr.bf16.mxu0 %v2844_v59 }
 0x6ac   :  { %1131 = vmatpush1.bf16.msra.mxu0 %v2852_v61 }
 0x6ad   :  { %1132 = vmatprep.subr.bf16.mxu0 %v2857_v63 }
 0x6b0   :  { %1133 = vmatpush1.bf16.msra.mxu0 %v2866_v3 }
 0x6b1   :  { %1134 = vmatprep.subr.bf16.mxu0 %v2871_v5 }
 0x6b4   :  { %1135 = vmatpush1.bf16.msra.mxu0 %v2878_v11 }
 0x6b5   :  { %1281 = vmatprep.subr.bf16.mxu0 %v2832_v53 }
 0x6ff   :  { %v941_v19 = vpop.permute.xlu1 %940 }
 0x700   :  { %2123 = vmatmul.mubr.msk.bf16.vlgmr.msra.gmra.mrb[16].mxu1 %vm217_vm1, %v941_v19 }
 0x701   :  { %1081 = vmatpush1.bf16.msra.mxu1 %v2834_v54  ;;  %1112 = vmatprep.mubr.bf16.mxu1 %v2585_v0 }
 0x702   :  { %1082 = vmatprep.subr.bf16.mxu1 %v2840_v57 }
 0x705   :  { %1083 = vmatpush1.bf16.msra.mxu1 %v2848_v60 }
 0x706   :  { %1084 = vmatprep.subr.bf16.mxu1 %v2854_v62 }
 0x709   :  { %1085 = vmatpush1.bf16.msra.mxu1 %v2862_v2 }
 0x70a   :  { %1086 = vmatprep.subr.bf16.mxu1 %v2868_v4 }
 0x70d   :  { %1087 = vmatpush1.bf16.msra.mxu1 %v2874_v8 }
 0x70e   :  { %1212 = vmatprep.subr.bf16.mxu1 %v2772_v6 }
 0x76a   :  { %v931_v21 = vpop.f32.mrb[16].mxu0 }
 0x76b   :  { %v933_v12 = vpop.f32.mrb[17].mxu0  ;;  %v932_v23 = vadd.f32 %v931_v21, %v2928_v38 }
 0x76c   :  { %v935_v27 = vpop.f32.mrb[18].mxu0 }
 0x76d   :  { %v936_v33 = vpop.f32.mrb[19].mxu0 }
 0x77a   :  { %v1038_v39 = vpop.f32.mrb[20].mxu0 }
 0x77b   :  { %v1039_v50 = vadd.f32 %v1038_v39, %v2814_v30  ;;  %v1040_v40 = vpop.f32.mrb[21].mxu0 }
 0x77c   :  { %v1042_v41 = vpop.f32.mrb[22].mxu0  ;;  %v1041_v25 = vadd.f32 %v1040_v40, %v2826_v47 }
 0x77d   :  { %v1046_v34 = vrot.slane %v1039_v50, 2  ;;  %v1043_v43 = vpop.f32.mrb[23].mxu0  ;;  %v934_v41 = vadd.f32 %v933_v12, %v2938_v22 }
 0x77e   :  { %v1056_v36 = vrot.slane %v1041_v25, 2 }
 0x77f   :  { %v1048_v44 = vadd.f32 %v1046_v34, %v2816_v31 }
 0x781   :  { %v2126_v45 = vmul.f32 -1.442695, %v1048_v44 }
 0x783   :  { %2272 = vpow2.f32 %v2126_v45 }
 0x78d   :  { %v2273_v46 = vpop.eup %2272 }
 0x78e   :  { %v1052_v28 = vadd.f32 1.0, %v2273_v46 }
 0x790   :  { %2274 = vrcp.f32 %v1052_v28 }
 0x79a   :  { %v2275_v48 = vpop.eup %2274 }
 0x79b   :  { %v1058_v49 = vmul.f32 %v2275_v48, %v1056_v36  ;;  %v1070_v52 = vmul.f32 %v2275_v48, %v1068_v29  ;;  %v1061_v44 = vsub.f32 1.0, %v2275_v48 }
 0x79d   :  { %v1059_v15 = vadd.f32 %v1058_v49, %v2829_v51 }
 0x79f   :  { %2276 = vtanh.f32 %v1059_v15 }
 0x7a9   :  { %v2277_v32 = vpop.eup %2276 }
 0x7aa   :  { %1063 = vrot.lane.b32.xlu0 %v2277_v32, %s2579_s6 }
 0x7d3   :  { %v979_v31 = vpop.f32.mrb[16].mxu1 }
 0x7d4   :  { %v980_v24 = vadd.f32 %v979_v31, %v2925_v37  ;;  %v981_v58 = vpop.f32.mrb[17].mxu1 }
 0x7d5   :  { %v983_v19 = vpop.f32.mrb[18].mxu1  ;;  %v982_v51 = vadd.f32 %v981_v58, %v2935_v20 }
 0x7d6   :  { %v986_v27 = vadd.f32 %v980_v24, %v932_v23  ;;  %v984_v33 = vpop.f32.mrb[19].mxu1 }
 0x7d8   :  { %v2124_v42 = vmul.f32 -1.442695, %v986_v27 }
 0x7da   :  { %2278 = vpow2.f32 %v2124_v42 }
 0x7e4   :  { %v2279_v39 = vpop.eup %2278 }
 0x7e5   :  { %v990_v50 = vadd.f32 1.0, %v2279_v39 }
 0x7e7   :  { %2280 = vrcp.f32 %v990_v50 }
 0x7f1   :  { %v2281_v40 = vpop.eup %2280 }
 0x7f2   :  { %v993_v34 = vmul.f32 %v2281_v40, %v982_v51  ;;  %v996_v36 = vsub.f32 1.0, %v2281_v40  ;;  %v1002_v12 = vmul.f32 %v2281_v40, %v3006_v17 }
 0x7f4   :  { %v994_v43 = vadd.f32 %v993_v34, %v934_v41 }
 0x7f6   :  { %2282 = vtanh.f32 %v994_v43  ;;  %v3097_v43 = vld [vmem:[#allocation3 + $0x18] sm:$0xff] }
 0x800   :  { %v2283_v21 = vpop.eup %2282 }
 0x801   :  { %998 = vrot.lane.b32.xlu0 %v2283_v21, %s2579_s6 }
 0x81c   :  { %v1064_v45 = vpop.permute.xlu0 %1063 }
 0x81d   :  { %v1066_v46 = vmul.f32 %v1064_v45, %v1061_v44 }
 0x81f   :  { %v3052_v28 = vadd.f32 %v1070_v52, %v1066_v46 }
 0x821   :  { %v1072_v25 = vpack.c.bf16 %v3052_v28, %v3052_v28  ;;  %v1270_v51 = vrot.slane %v3052_v28, 6 }
 0x823   :  { %v1074_v29 = vrot.slane %v1072_v25, 3 }
 0x825   :  { %1075 = vrot.lane.b32.xlu1 %v1074_v29, %s2579_s6 }
 0x873   :  { %v999_v49 = vpop.permute.xlu0 %998 }
 0x874   :  { %v1001_v15 = vmul.f32 %v999_v49, %v996_v36 }
 0x876   :  { %v3058_v32 = vadd.f32 %v1002_v12, %v1001_v15 }
 0x878   :  { %v1121_v48 = vpack.c.bf16 %v3058_v32, %v3058_v32 }
 0x87a   :  { %1123 = vrot.lane.b32.xlu1 %v1121_v48, %s2579_s6 }
 0x897   :  { %v1076_v52 = vpop.permute.xlu1 %1075 }
 0x898   :  { %2127 = vmatmul.mubr.msk.bf16.vlgmr.msra.gmra.mrb[20].mxu1 %vm217_vm1, %v1076_v52 }
 0x899   :  { %1213 = vmatpush1.bf16.msra.mxu1 %v2774_v7  ;;  %1244 = vmatprep.mubr.bf16.mxu1 %v2585_v0 }
 0x89a   :  { %1214 = vmatprep.subr.bf16.mxu1 %v2778_v9 }
 0x89d   :  { %1215 = vmatpush1.bf16.msra.mxu1 %v2780_v10 }
 0x89e   :  { %1216 = vmatprep.subr.bf16.mxu1 %v2783_v13 }
 0x8a1   :  { %1217 = vmatpush1.bf16.msra.mxu1 %v2786_v14 }
 0x8a2   :  { %1218 = vmatprep.subr.bf16.mxu1 %v2789_v16 }
 0x8a5   :  { %1219 = vmatpush1.bf16.msra.mxu1 %v2791_v18 }
 0x8a6   :  { %1329 = vmatprep.subr.bf16.mxu1 %v2836_v55 }
 0x8a8   :  { %2130 = vmatmul.mubr.msk.bf16.vlgmr.msra.gmra.mrb[24].mxu1 %vm217_vm1, %v1076_v52 }
 0x8a9   :  { %1330 = vmatpush1.bf16.msra.mxu1 %v2838_v56  ;;  %1361 = vmatprep.mubr.bf16.mxu1 %v2585_v0 }
 0x8aa   :  { %1331 = vmatprep.subr.bf16.mxu1 %v2844_v59 }
 0x8ad   :  { %1332 = vmatpush1.bf16.msra.mxu1 %v2852_v61 }
 0x8ae   :  { %1333 = vmatprep.subr.bf16.mxu1 %v2857_v63 }
 0x8b1   :  { %1334 = vmatpush1.bf16.msra.mxu1 %v2866_v3 }
 0x8b2   :  { %1335 = vmatprep.subr.bf16.mxu1 %v2871_v5 }
 0x8b5   :  { %1336 = vmatpush1.bf16.msra.mxu1 %v2878_v11 }
 0x8b6   :  { %1464 = vmatprep.subr.bf16.mxu1 %v2832_v53 }
 0x8ec   :  { %v1124_v7 = vpop.permute.xlu1 %1123 }
 0x8ed   :  { %2128 = vmatmul.mubr.msk.bf16.vlgmr.msra.gmra.mrb[24].mxu0 %vm217_vm1, %v1124_v7 }
 0x8ee   :  { %1282 = vmatpush1.bf16.msra.mxu0 %v2834_v54  ;;  %1313 = vmatprep.mubr.bf16.mxu0 %v2585_v0 }
 0x8ef   :  { %1283 = vmatprep.subr.bf16.mxu0 %v2840_v57 }
 0x8f2   :  { %1284 = vmatpush1.bf16.msra.mxu0 %v2848_v60 }
 0x8f3   :  { %1285 = vmatprep.subr.bf16.mxu0 %v2854_v62 }
 0x8f6   :  { %1286 = vmatpush1.bf16.msra.mxu0 %v2862_v2 }
 0x8f7   :  { %1287 = vmatprep.subr.bf16.mxu0 %v2868_v4 }
 0x8fa   :  { %1288 = vmatpush1.bf16.msra.mxu0 %v2874_v8 }
 0x8fb   :  { %1388 = vmatprep.subr.bf16.mxu0 %v2772_v6 }
 0x96b   :  { %v1114_v9 = vpop.f32.mrb[20].mxu1 }
 0x96c   :  { %v1116_v10 = vpop.f32.mrb[21].mxu1  ;;  %v1115_v46 = vadd.f32 %v1114_v9, %v2928_v38 }
 0x96d   :  { %v1118_v13 = vpop.f32.mrb[22].mxu1 }
 0x96e   :  { %v1119_v31 = vpop.f32.mrb[23].mxu1  ;;  %v1117_v13 = vadd.f32 %v1116_v10, %v2938_v22 }
 0x97b   :  { %v1246_v23 = vpop.f32.mrb[24].mxu1 }
 0x97c   :  { %v1247_v24 = vadd.f32 %v1246_v23, %v2814_v30  ;;  %v1248_v58 = vpop.f32.mrb[25].mxu1 }
 0x97d   :  { %v1250_v19 = vpop.f32.mrb[26].mxu1  ;;  %v1249_v6 = vadd.f32 %v1248_v58, %v2826_v47 }
 0x97e   :  { %v1253_v27 = vadd.f32 %v1247_v24, %v2818_v35  ;;  %v1251_v33 = vpop.f32.mrb[27].mxu1 }
 0x980   :  { %v2131_v42 = vmul.f32 -1.442695, %v1253_v27 }
 0x982   :  { %2284 = vpow2.f32 %v2131_v42 }
 0x98c   :  { %v2285_v39 = vpop.eup %2284 }
 0x98d   :  { %v1257_v50 = vadd.f32 1.0, %v2285_v39 }
 0x98f   :  { %2286 = vrcp.f32 %v1257_v50 }
 0x999   :  { %v2287_v40 = vpop.eup %2286 }
 0x99a   :  { %v1260_v41 = vmul.f32 %v2287_v40, %v1249_v6  ;;  %v1272_v34 = vmul.f32 %v2287_v40, %v1270_v51  ;;  %v1263_v24 = vsub.f32 1.0, %v2287_v40 }
 0x99c   :  { %v1261_v21 = vadd.f32 %v1260_v41, %v3097_v43  ;;  %v3118_v41 = vld [vmem:[#allocation10] ss:$8 sps:$4 sm:$0xff]  }
 0x99e   :  { %2288 = vtanh.f32 %v1261_v21  ;;  %v3125_v21 = vld [vmem:[#allocation10 + $0x10] ss:$8 sps:$4 sm:$0xff]  }
 0x9a8   :  { %v2289_v44 = vpop.eup %2288 }
 0x9a9   :  { %1265 = vrot.lane.b32.xlu0 %v2289_v44, %s2579_s6  ;;  %v3128_v44 = vld [vmem:[#allocation10 + $0x24] ss:$8 sps:$4 sm:$0xff]  }
 0x9c0   :  { %v1162_v45 = vpop.f32.mrb[24].mxu0 }
 0x9c1   :  { %v1163_v25 = vadd.f32 %v1162_v45, %v2925_v37  ;;  %v1164_v29 = vpop.f32.mrb[25].mxu0 }
 0x9c2   :  { %v1166_v28 = vpop.f32.mrb[26].mxu0  ;;  %v1165_v52 = vadd.f32 %v1164_v29, %v2935_v20 }
 0x9c3   :  { %v1169_v36 = vadd.f32 %v1163_v25, %v1115_v46  ;;  %v1167_v49 = vpop.f32.mrb[27].mxu0 }
 0x9c5   :  { %v2129_v12 = vmul.f32 -1.442695, %v1169_v36 }
 0x9c7   :  { %2290 = vpow2.f32 %v2129_v12 }
 0x9d1   :  { %v2291_v15 = vpop.eup %2290 }
 0x9d2   :  { %v1173_v48 = vadd.f32 1.0, %v2291_v15 }
 0x9d4   :  { %2292 = vrcp.f32 %v1173_v48 }
 0x9de   :  { %v2293_v7 = vpop.eup %2292 }
 0x9df   :  { %v1176_v31 = vmul.f32 %v2293_v7, %v1165_v52  ;;  %v1179_v42 = vsub.f32 1.0, %v2293_v7  ;;  %v1185_v10 = vmul.f32 %v2293_v7, %v3058_v32 }
 0x9e1   :  { %v1177_v23 = vadd.f32 %v1176_v31, %v1117_v13 }
 0x9e3   :  { %2294 = vtanh.f32 %v1177_v23 }
 0x9ed   :  { %v2295_v9 = vpop.eup %2294 }
 0x9ee   :  { %1181 = vrot.lane.b32.xlu1 %v2295_v9, %s2579_s6 }
 0xa1b   :  { %v1266_v58 = vpop.permute.xlu0 %1265 }
 0xa1c   :  { %v1268_v19 = vmul.f32 %v1266_v58, %v1263_v24 }
 0xa1e   :  { %v3106_v27 = vadd.f32 %v1272_v34, %v1268_v19  ;;  %v3122_v34 = vld [vmem:[#allocation10 + $0x14] ss:$8 sps:$4 sm:$0xff]  }
 0xa20   :  { %v1274_v33 = vpack.c.bf16 %v3106_v27, %v3106_v27  ;;  %v1452_v25 = vrot.slane %v3106_v27, 6 }
 0xa22   :  { %1276 = vrot.lane.b32.xlu0 %v1274_v33, %s2579_s6 }
 0xa60   :  { %v1182_v39 = vpop.permute.xlu1 %1181 }
 0xa61   :  { %v1184_v50 = vmul.f32 %v1182_v39, %v1179_v42 }
 0xa63   :  { %v3112_v51 = vadd.f32 %v1185_v10, %v1184_v50 }
 0xa65   :  { %v1322_v6 = vpack.c.bf16 %v3112_v51, %v3112_v51 }
 0xa67   :  { %1324 = vrot.lane.b32.xlu1 %v1322_v6, %s2579_s6 }
 0xa94   :  { %v1277_v40 = vpop.permute.xlu0 %1276 }
 0xa95   :  { %2132 = vmatmul.mubr.msk.bf16.vlgmr.msra.gmra.mrb[28].mxu0 %vm217_vm1, %v1277_v40 }
 0xa96   :  { %1389 = vmatpush1.bf16.msra.mxu0 %v3118_v41  ;;  %1420 = vmatprep.mubr.bf16.mxu0 %v2585_v0 }
 0xa97   :  { %1390 = vmatprep.subr.bf16.mxu0 %v3122_v34 }
 0xa9a   :  { %1391 = vmatpush1.bf16.msra.mxu0 %v3125_v21 }
 0xa9b   :  { %1392 = vmatprep.subr.bf16.mxu0 %v3128_v44 }
 0xa9e   :  { %1393 = vmatpush1.bf16.msra.mxu0 %v2786_v14 }
 0xa9f   :  { %1394 = vmatprep.subr.bf16.mxu0 %v2789_v16  ;;  %v3154_v16 = vld [vmem:[#allocation10 + $0x4] ss:$8 sps:$4 sm:$0xff]  }
 0xaa2   :  { %1395 = vmatpush1.bf16.msra.mxu0 %v2791_v18 }
 0xaa3   :  { %1512 = vmatprep.subr.bf16.mxu0 %v2836_v55 }
 0xaa5   :  { %2135 = vmatmul.mubr.msk.bf16.vlgmr.msra.gmra.mrb[32].mxu0 %vm217_vm1, %v1277_v40 }
 0xaa6   :  { %1513 = vmatpush1.bf16.msra.mxu0 %v2838_v56  ;;  %1544 = vmatprep.mubr.bf16.mxu0 %v2585_v0 }
 0xaa7   :  { %1514 = vmatprep.subr.bf16.mxu0 %v2844_v59 }
 0xaaa   :  { %1515 = vmatpush1.bf16.msra.mxu0 %v2852_v61 }
 0xaab   :  { %1516 = vmatprep.subr.bf16.mxu0 %v2857_v63 }
 0xaae   :  { %1517 = vmatpush1.bf16.msra.mxu0 %v2866_v3 }
 0xaaf   :  { %1518 = vmatprep.subr.bf16.mxu0 %v2871_v5 }
 0xab2   :  { %1519 = vmatpush1.bf16.msra.mxu0 %v2878_v11 }
 0xab3   :  { %1647 = vmatprep.subr.bf16.mxu0 %v2832_v53 }
 0xad9   :  { %v1325_v14 = vpop.permute.xlu1 %1324 }
 0xada   :  { %2133 = vmatmul.mubr.msk.bf16.vlgmr.msra.gmra.mrb[28].mxu1 %vm217_vm1, %v1325_v14 }
 0xadb   :  { %1465 = vmatpush1.bf16.msra.mxu1 %v2834_v54  ;;  %1496 = vmatprep.mubr.bf16.mxu1 %v2585_v0 }
 0xadc   :  { %1466 = vmatprep.subr.bf16.mxu1 %v2840_v57 }
 0xadf   :  { %1467 = vmatpush1.bf16.msra.mxu1 %v2848_v60 }
 0xae0   :  { %1468 = vmatprep.subr.bf16.mxu1 %v2854_v62 }
 0xae3   :  { %1469 = vmatpush1.bf16.msra.mxu1 %v2862_v2 }
 0xae4   :  { %1470 = vmatprep.subr.bf16.mxu1 %v2868_v4 }
 0xae7   :  { %1471 = vmatpush1.bf16.msra.mxu1 %v2874_v8 }
 0xae8   :  { %1571 = vmatprep.subr.bf16.mxu1 %v3154_v16 }
 0xb68   :  { %v1315_v18 = vpop.f32.mrb[28].mxu0 }
 0xb69   :  { %v1317_v53 = vpop.f32.mrb[29].mxu0  ;;  %v1316_v48 = vadd.f32 %v1315_v18, %v2928_v38 }
 0xb6a   :  { %v1319_v54 = vpop.f32.mrb[30].mxu0  ;;  %v1318_v33 = vadd.f32 %v1317_v53, %v2938_v22 }
 0xb6b   :  { %v1320_v55 = vpop.f32.mrb[31].mxu0 }
 0xb78   :  { %v1422_v56 = vpop.f32.mrb[32].mxu0 }
 0xb79   :  { %v1423_v57 = vadd.f32 %v1422_v56, %v2814_v30  ;;  %v1424_v59 = vpop.f32.mrb[33].mxu0 }
 0xb7a   :  { %v1426_v60 = vpop.f32.mrb[34].mxu0  ;;  %v1425_v46 = vadd.f32 %v1424_v59, %v2826_v47 }
 0xb7b   :  { %v1430_v61 = vrot.slane %v1423_v57, 6  ;;  %v1427_v62 = vpop.f32.mrb[35].mxu0 }
 0xb7c   :  { %v1440_v29 = vrot.slane %v1425_v46, 6  ;;  %v3185_v62 = vld [vmem:[#allocation10 + $0x20] ss:$8 sps:$4 sm:$0xff]   ;;  %v3202_v46 = vld [vmem:[#allocation13 + $0x14] ss:$8 sps:$4 sm:$0xff]  }
 0xb7d   :  { %v1432_v2 = vadd.f32 %v1430_v61, %v2818_v35 }
 0xb7f   :  { %v2136_v4 = vmul.f32 -1.442695, %v1432_v2  ;;  %v3188_v2 = vld [vmem:[#allocation10 + $0x34] ss:$8 sps:$4 sm:$0xff]  }
 0xb81   :  { %2296 = vpow2.f32 %v2136_v4  ;;  %v3191_v4 = vld [vmem:[#allocation10 + $0x30] ss:$8 sps:$4 sm:$0xff]  }
 0xb8b   :  { %v2297_v8 = vpop.eup %2296 }
 0xb8c   :  { %v1436_v45 = vadd.f32 1.0, %v2297_v8  ;;  %v3194_v8 = vld [vmem:[#allocation13 + $0x4] ss:$8 sps:$4 sm:$0xff]  }
 0xb8e   :  { %2298 = vrcp.f32 %v1436_v45  ;;  %v3198_v45 = vld [vmem:[#allocation13] ss:$8 sps:$4 sm:$0xff]  }
 0xb98   :  { %v2299_v28 = vpop.eup %2298 }
 0xb99   :  { %v1442_v36 = vmul.f32 %v2299_v28, %v1440_v29  ;;  %v1454_v49 = vmul.f32 %v2299_v28, %v1452_v25  ;;  %v1445_v50 = vsub.f32 1.0, %v2299_v28  ;;  %v3205_v25 = vld [vmem:[#allocation13 + $0x10] ss:$8 sps:$4 sm:$0xff]   ;;  %v2350_v29 = vld [vmem:[#allocation11 + $0x4] ss:$8 sps:$4 sm:$0xff]  }
 0xb9b   :  { %v1443_v12 = vadd.f32 %v1442_v36, %v3097_v43  ;;  %v3213_v36 = vld [vmem:[#allocation11] ss:$8 sps:$4 sm:$0xff]  }
 0xb9d   :  { %2300 = vtanh.f32 %v1443_v12  ;;  %v3232_v12 = vld [vmem:[#allocation11 + $0x30] ss:$8 sps:$4 sm:$0xff]  }
 0xba7   :  { %v2301_v15 = vpop.eup %2300 }
 0xba8   :  { %1447 = vrot.lane.b32.xlu0 %v2301_v15, %s2579_s6 }
 0xbad   :  { %v1363_v35 = vpop.f32.mrb[28].mxu1 }
 0xbae   :  { %v1364_v52 = vadd.f32 %v1363_v35, %v2925_v37  ;;  %v1365_v7 = vpop.f32.mrb[29].mxu1 }
 0xbaf   :  { %v1367_v13 = vpop.f32.mrb[30].mxu1  ;;  %v1366_v19 = vadd.f32 %v1365_v7, %v2935_v20 }
 0xbb0   :  { %v1370_v31 = vadd.f32 %v1364_v52, %v1316_v48  ;;  %v1368_v23 = vpop.f32.mrb[31].mxu1 }
 0xbb2   :  { %v2134_v9 = vmul.f32 -1.442695, %v1370_v31 }
 0xbb4   :  { %2302 = vpow2.f32 %v2134_v9 }
 0xbbe   :  { %v2303_v24 = vpop.eup %2302 }
 0xbbf   :  { %v1374_v58 = vadd.f32 1.0, %v2303_v24 }
 0xbc1   :  { %2304 = vrcp.f32 %v1374_v58  ;;  %v3237_v58 = vld [vmem:[#allocation3 + $0x10] sm:$0xff] }
 0xbcb   :  { %v2305_v27 = vpop.eup %2304 }
 0xbcc   :  { %v1377_v42 = vmul.f32 %v2305_v27, %v1366_v19  ;;  %v1380_v55 = vsub.f32 1.0, %v2305_v27  ;;  %v1386_v53 = vmul.f32 %v2305_v27, %v3112_v51 }
 0xbce   :  { %v1378_v39 = vadd.f32 %v1377_v42, %v1318_v33 }
 0xbd0   :  { %2306 = vtanh.f32 %v1378_v39 }
 0xbda   :  { %v2307_v10 = vpop.eup %2306 }
 0xbdb   :  { %1382 = vrot.lane.b32.xlu1 %v2307_v10, %s2579_s6 }
 0xc1a   :  { %v1448_v6 = vpop.permute.xlu0 %1447 }
 0xc1b   :  { %v1450_v40 = vmul.f32 %v1448_v6, %v1445_v50 }
 0xc1d   :  { %v3168_v14 = vadd.f32 %v1454_v49, %v1450_v40  ;;  %v3217_v49 = vld [vmem:[#allocation11 + $0x14] ss:$8 sps:$4 sm:$0xff]  }
 0xc1f   :  { %v1456_v18 = vpack.c.bf16 %v3168_v14, %v3168_v14  ;;  %v1635_v39 = vrot.slane %v3168_v14, 6 }
 0xc21   :  { %v1458_v54 = vrot.slane %v1456_v18, 1 }
 0xc23   :  { %1459 = vrot.lane.b32.xlu0 %v1458_v54, %s2579_s6 }
 0xc4d   :  { %v1383_v56 = vpop.permute.xlu1 %1382 }
 0xc4e   :  { %v1385_v57 = vmul.f32 %v1383_v56, %v1380_v55 }
 0xc50   :  { %v3174_v59 = vadd.f32 %v1386_v53, %v1385_v57 }
 0xc52   :  { %v1505_v60 = vpack.c.bf16 %v3174_v59, %v3174_v59 }
 0xc54   :  { %1507 = vrot.lane.b32.xlu1 %v1505_v60, %s2579_s6 }
 0xc95   :  { %v1460_v61 = vpop.permute.xlu0 %1459 }
 0xc96   :  { %2137 = vmatmul.mubr.msk.bf16.vlgmr.msra.gmra.mrb[32].mxu1 %vm217_vm1, %v1460_v61 }
 0xc97   :  { %1572 = vmatpush1.bf16.msra.mxu1 %v3118_v41  ;;  %1603 = vmatprep.mubr.bf16.mxu1 %v2585_v0 }
 0xc98   :  { %1573 = vmatprep.subr.bf16.mxu1 %v3122_v34 }
 0xc9b   :  { %1574 = vmatpush1.bf16.msra.mxu1 %v3125_v21 }
 0xc9c   :  { %1575 = vmatprep.subr.bf16.mxu1 %v3128_v44 }
 0xc9f   :  { %1576 = vmatpush1.bf16.msra.mxu1 %v3185_v62 }
 0xca0   :  { %1577 = vmatprep.subr.bf16.mxu1 %v3188_v2 }
 0xca3   :  { %1578 = vmatpush1.bf16.msra.mxu1 %v3191_v4 }
 0xca4   :  { %1695 = vmatprep.subr.bf16.mxu1 %v3194_v8 }
 0xca6   :  { %2140 = vmatmul.mubr.msk.bf16.vlgmr.msra.gmra.mrb[36].mxu1 %vm217_vm1, %v1460_v61 }
 0xca7   :  { %1696 = vmatpush1.bf16.msra.mxu1 %v3198_v45  ;;  %1727 = vmatprep.mubr.bf16.mxu1 %v2585_v0 }
 0xca8   :  { %1697 = vmatprep.subr.bf16.mxu1 %v3202_v46 }
 0xcab   :  { %1698 = vmatpush1.bf16.msra.mxu1 %v3205_v25 }
 0xcac   :  { %1699 = vmatprep.subr.bf16.mxu1 %v2857_v63  ;;  %v3220_v63 = vld [vmem:[#allocation11 + $0x10] ss:$8 sps:$4 sm:$0xff]  }
 0xcaf   :  { %1700 = vmatpush1.bf16.msra.mxu1 %v2866_v3  ;;  %v3223_v3 = vld [vmem:[#allocation11 + $0x24] ss:$8 sps:$4 sm:$0xff]  }
 0xcb0   :  { %1701 = vmatprep.subr.bf16.mxu1 %v2871_v5  ;;  %v3226_v5 = vld [vmem:[#allocation11 + $0x20] ss:$8 sps:$4 sm:$0xff]  }
 0xcb3   :  { %1702 = vmatpush1.bf16.msra.mxu1 %v2878_v11  ;;  %v3229_v11 = vld [vmem:[#allocation11 + $0x34] ss:$8 sps:$4 sm:$0xff]  }
 0xcb4   :  { %1830 = vmatprep.subr.bf16.mxu1 %v2350_v29 }
 0xcc6   :  { %v1508_v28 = vpop.permute.xlu1 %1507 }
 0xcc7   :  { %2138 = vmatmul.mubr.msk.bf16.vlgmr.msra.gmra.mrb[36].mxu0 %vm217_vm1, %v1508_v28 }
 0xcc8   :  { %1648 = vmatpush1.bf16.msra.mxu0 %v3213_v36  ;;  %1679 = vmatprep.mubr.bf16.mxu0 %v2585_v0 }
 0xcc9   :  { %1649 = vmatprep.subr.bf16.mxu0 %v3217_v49 }
 0xccc   :  { %1650 = vmatpush1.bf16.msra.mxu0 %v3220_v63 }
 0xccd   :  { %1651 = vmatprep.subr.bf16.mxu0 %v3223_v3 }
 0xcd0   :  { %1652 = vmatpush1.bf16.msra.mxu0 %v3226_v5 }
 0xcd1   :  { %1653 = vmatprep.subr.bf16.mxu0 %v3229_v11 }
 0xcd4   :  { %1654 = vmatpush1.bf16.msra.mxu0 %v3232_v12 }
 0xcd5   :  { %1754 = vmatprep.subr.bf16.mxu0 %v3154_v16 }
 0xd69   :  { %v1498_v15 = vpop.f32.mrb[32].mxu1 }
 0xd6a   :  { %v1500_v35 = vpop.f32.mrb[33].mxu1  ;;  %v1499_v54 = vadd.f32 %v1498_v15, %v2928_v38 }
 0xd6b   :  { %v1502_v48 = vpop.f32.mrb[34].mxu1 }
 0xd6c   :  { %v1503_v52 = vpop.f32.mrb[35].mxu1 }
 0xd79   :  { %v1605_v7 = vpop.f32.mrb[36].mxu1 }
 0xd7a   :  { %v1606_v13 = vadd.f32 %v1605_v7, %v2814_v30  ;;  %v1607_v31 = vpop.f32.mrb[37].mxu1  ;;  %v1501_v7 = vadd.f32 %v1500_v35, %v2938_v22 }
 0xd7b   :  { %v1609_v23 = vpop.f32.mrb[38].mxu1  ;;  %v1608_v16 = vadd.f32 %v1607_v31, %v2826_v47 }
 0xd7c   :  { %v1613_v9 = vrot.slane %v1606_v13, 4  ;;  %v1610_v24 = vpop.f32.mrb[39].mxu1 }
 0xd7d   :  { %v1623_v10 = vrot.slane %v1608_v16, 4 }
 0xd7e   :  { %v1615_v19 = vadd.f32 %v3237_v58, %v1613_v9 }
 0xd80   :  { %v2141_v27 = vmul.f32 -1.442695, %v1615_v19 }
 0xd82   :  { %2308 = vpow2.f32 %v2141_v27 }
 0xd8c   :  { %v2309_v33 = vpop.eup %2308 }
 0xd8d   :  { %v1619_v42 = vadd.f32 1.0, %v2309_v33 }
 0xd8f   :  { %2310 = vrcp.f32 %v1619_v42 }
 0xd99   :  { %v2311_v50 = vpop.eup %2310 }
 0xd9a   :  { %v1625_v6 = vmul.f32 %v2311_v50, %v1623_v10  ;;  %v1546_v40 = vpop.f32.mrb[36].mxu0  ;;  %v1637_v18 = vmul.f32 %v2311_v50, %v1635_v39  ;;  %v1628_v9 = vsub.f32 1.0, %v2311_v50 }
 0xd9b   :  { %v1547_v55 = vadd.f32 %v1546_v40, %v2925_v37  ;;  %v1548_v56 = vpop.f32.mrb[37].mxu0 }
 0xd9c   :  { %v1626_v53 = vadd.f32 %v1625_v6, %v3097_v43  ;;  %v1550_v57 = vpop.f32.mrb[38].mxu0  ;;  %v1549_v52 = vadd.f32 %v1548_v56, %v2935_v20 }
 0xd9d   :  { %v1553_v60 = vadd.f32 %v1547_v55, %v1499_v54  ;;  %v1551_v61 = vpop.f32.mrb[39].mxu0 }
 0xd9e   :  { %2312 = vtanh.f32 %v1626_v53 }
 0xd9f   :  { %v2139_v29 = vmul.f32 -1.442695, %v1553_v60 }
 0xda1   :  { %2314 = vpow2.f32 %v2139_v29 }
 0xda8   :  { %v2313_v28 = vpop.eup %2312 }
 0xda9   :  { %1630 = vrot.lane.b32.xlu0 %v2313_v28, %s2579_s6 }
 0xdab   :  { %v2315_v14 = vpop.eup %2314 }
 0xdac   :  { %v1557_v48 = vadd.f32 1.0, %v2315_v14 }
 0xdae   :  { %2316 = vrcp.f32 %v1557_v48 }
 0xdb8   :  { %v2317_v15 = vpop.eup %2316 }
 0xdb9   :  { %v1560_v13 = vmul.f32 %v2317_v15, %v1549_v52  ;;  %v1563_v16 = vsub.f32 1.0, %v2317_v15  ;;  %v1569_v35 = vmul.f32 %v2317_v15, %v3174_v59 }
 0xdbb   :  { %v1561_v31 = vadd.f32 %v1560_v13, %v1501_v7 }
 0xdbd   :  { %2318 = vtanh.f32 %v1561_v31 }
 0xdc7   :  { %v2319_v23 = vpop.eup %2318 }
 0xdc8   :  { %1565 = vrot.lane.b32.xlu1 %v2319_v23, %s2579_s6 }
 0xe1b   :  { %v1631_v24 = vpop.permute.xlu0 %1630 }
 0xe1c   :  { %v1633_v19 = vmul.f32 %v1631_v24, %v1628_v9 }
 0xe1e   :  { %v3249_v27 = vadd.f32 %v1637_v18, %v1633_v19 }
 0xe20   :  { %v1639_v33 = vpack.c.bf16 %v3249_v27, %v3249_v27 }
 0xe22   :  { %v1641_v42 = vrot.slane %v1639_v33, 2 }
 0xe24   :  { %1642 = vrot.lane.b32.xlu0 %v1641_v42, %s2579_s6 }
 0xe3a   :  { %v1566_v39 = vpop.permute.xlu1 %1565 }
 0xe3b   :  { %v1568_v10 = vmul.f32 %v1566_v39, %v1563_v16 }
 0xe3d   :  { %v3255_v6 = vadd.f32 %v1569_v35, %v1568_v10 }
 0xe3f   :  { %v1688_v50 = vpack.c.bf16 %v3255_v6, %v3255_v6 }
 0xe41   :  { %1690 = vrot.lane.b32.xlu1 %v1688_v50, %s2579_s6 }
 0xe96   :  { %v1643_v40 = vpop.permute.xlu0 %1642 }
 0xe97   :  { %2142 = vmatmul.mubr.msk.bf16.vlgmr.msra.gmra.mrb[40].mxu0 %vm217_vm1, %v1643_v40 }
 0xe98   :  { %1755 = vmatpush1.bf16.msra.mxu0 %v3118_v41  ;;  %1786 = vmatprep.mubr.bf16.mxu0 %v2585_v0  ;;  %v2359_v41 = vld [vmem:[#allocation13 + $0x24] ss:$8 sps:$4 sm:$0xff]  }
 0xe99   :  { %1756 = vmatprep.subr.bf16.mxu0 %v3122_v34  ;;  %v2360_v34 = vld [vmem:[#allocation13 + $0x20] ss:$8 sps:$4 sm:$0xff]  }
 0xe9c   :  { %1757 = vmatpush1.bf16.msra.mxu0 %v3125_v21  ;;  %v2361_v21 = vld [vmem:[#allocation13 + $0x34] ss:$8 sps:$4 sm:$0xff]  }
 0xe9d   :  { %1758 = vmatprep.subr.bf16.mxu0 %v3128_v44 }
 0xea0   :  { %1759 = vmatpush1.bf16.msra.mxu0 %v3185_v62  ;;  %v2362_v62 = vld [vmem:[#allocation13 + $0x30] ss:$8 sps:$4 sm:$0xff]  }
 0xea1   :  { %1760 = vmatprep.subr.bf16.mxu0 %v3188_v2 }
 0xea4   :  { %1761 = vmatpush1.bf16.msra.mxu0 %v3191_v4 }
 0xea5   :  { %1878 = vmatprep.subr.bf16.mxu0 %v3194_v8 }
 0xea7   :  { %2145 = vmatmul.mubr.msk.bf16.vlgmr.msra.gmra.mrb[44].mxu0 %vm217_vm1, %v1643_v40 }
 0xea8   :  { %1879 = vmatpush1.bf16.msra.mxu0 %v3198_v45  ;;  %1910 = vmatprep.mubr.bf16.mxu0 %v2585_v0 }
 0xea9   :  { %1880 = vmatprep.subr.bf16.mxu0 %v3202_v46 }
 0xeac   :  { %1881 = vmatpush1.bf16.msra.mxu0 %v3205_v25 }
 0xead   :  { %1882 = vmatprep.subr.bf16.mxu0 %v2359_v41 }
 0xeb0   :  { %1883 = vmatpush1.bf16.msra.mxu0 %v2360_v34  ;;  %v1188_v34 = vrot.slane %v3006_v17, 6 }
 0xeb1   :  { %1884 = vmatprep.subr.bf16.mxu0 %v2361_v21  ;;  %v1191_v21 = vrot.slane %v3058_v32, 4 }
 0xeb3   :  { %v1691_v44 = vpop.permute.xlu1 %1690 }
 0xeb4   :  { %2143 = vmatmul.mubr.msk.bf16.vlgmr.msra.gmra.mrb[40].mxu1 %vm217_vm1, %v1691_v44  ;;  %1885 = vmatpush1.bf16.msra.mxu0 %v2362_v62  ;;  %v1194_v62 = vrot.slane %v3112_v51, 2 }
 0xeb5   :  { %1831 = vmatpush1.bf16.msra.mxu1 %v3213_v36  ;;  %1862 = vmatprep.mubr.bf16.mxu1 %v2585_v0 }
 0xeb6   :  { %1832 = vmatprep.subr.bf16.mxu1 %v3217_v49 }
 0xeb9   :  { %1833 = vmatpush1.bf16.msra.mxu1 %v3220_v63 }
 0xeba   :  { %1834 = vmatprep.subr.bf16.mxu1 %v3223_v3 }
 0xebd   :  { %1835 = vmatpush1.bf16.msra.mxu1 %v3226_v5 }
 0xebe   :  { %1836 = vmatprep.subr.bf16.mxu1 %v3229_v11 }
 0xec1   :  { %1837 = vmatpush1.bf16.msra.mxu1 %v3232_v12 }
 0xec2   :  { %2161 = vmatprep.subr.bf16.mxu1 %v2586_v1 }
 0xf6a   :  { %v1681_v2 = vpop.f32.mrb[40].mxu0 }
 0xf6b   :  { %v1683_v4 = vpop.f32.mrb[41].mxu0  ;;  %v1682_v12 = vadd.f32 %v1681_v2, %v2928_v38  ;;  %v1197_v2 = vsel %vm1196_vm2, %v2959_v26, %v1188_v34 }
 0xf6c   :  { %v1685_v8 = vpop.f32.mrb[42].mxu0  ;;  %v1684_v23 = vadd.f32 %v1683_v4, %v2938_v22  ;;  %v1199_v4 = vsel %vm1198_vm3, %v1197_v2, %v1191_v21 }
 0xf6d   :  { %v1686_v45 = vpop.f32.mrb[43].mxu0  ;;  %v1201_v8 = vsel %vm1200_vm4, %v1199_v4, %v1194_v62 }
 0xf7a   :  { %v1788_v46 = vpop.f32.mrb[44].mxu0 }
 0xf7b   :  { %v1789_v0 = vadd.f32 %v1788_v46, %v2814_v30  ;;  %v1790_v25 = vpop.f32.mrb[45].mxu0 }
 0xf7c   :  { %v1792_v36 = vpop.f32.mrb[46].mxu0  ;;  %v1791_v61 = vadd.f32 %v1790_v25, %v2826_v47 }
 0xf7d   :  { %v1796_v49 = vrot.slane %v1789_v0, 2  ;;  %v1793_v63 = vpop.f32.mrb[47].mxu0 }
 0xf7e   :  { %v1806_v28 = vrot.slane %v1791_v61, 2  ;;  %v2239_v61 = vld [vmem:[%s3375_s9 + $0x8] sm:$0xff]  }
 0xf7f   :  { %v1798_v3 = vadd.f32 %v3237_v58, %v1796_v49  ;;  %v1818_v58 = vrot.slane %v3249_v27, 6 }
 0xf81   :  { %v2146_v5 = vmul.f32 -1.442695, %v1798_v3 }
 0xf83   :  { %2320 = vpow2.f32 %v2146_v5 }
 0xf87   :  { %v1729_v11 = vpop.f32.mrb[40].mxu1 }
 0xf88   :  { %v1730_v18 = vadd.f32 %v1729_v11, %v2925_v37  ;;  %v1731_v54 = vpop.f32.mrb[41].mxu1 }
 0xf89   :  { %v1733_v55 = vpop.f32.mrb[42].mxu1  ;;  %v1732_v13 = vadd.f32 %v1731_v54, %v2935_v20 }
 0xf8a   :  { %v1736_v56 = vadd.f32 %v1730_v18, %v1682_v12  ;;  %v1734_v53 = vpop.f32.mrb[43].mxu1 }
 0xf8c   :  { %v2144_v57 = vmul.f32 -1.442695, %v1736_v56 }
 0xf8d   :  { %v2321_v60 = vpop.eup %2320 }
 0xf8e   :  { %v1802_v30 = vadd.f32 1.0, %v2321_v60  ;;  %2322 = vpow2.f32 %v2144_v57 }
 0xf90   :  { %2324 = vrcp.f32 %v1802_v30 }
 0xf98   :  { %v2323_v29 = vpop.eup %2322 }
 0xf99   :  { %v1740_v14 = vadd.f32 1.0, %v2323_v29  ;;  %v2241_v29 = vld [vmem:[%s3375_s9 + $0x18] sm:$0xff]  }
 0xf9a   :  { %v2325_v48 = vpop.eup %2324 }
 0xf9b   :  { %v1808_v52 = vmul.f32 %v2325_v48, %v1806_v28  ;;  %2326 = vrcp.f32 %v1740_v14  ;;  %v1820_v15 = vmul.f32 %v2325_v48, %v1818_v58  ;;  %v1811_v27 = vsub.f32 1.0, %v2325_v48 }
 0xf9c   :  { %v1938_v28 = vrot.slane %v3255_v6, 6 }
 0xf9d   :  { %v1809_v7 = vadd.f32 %v1808_v52, %v3097_v43 }
 0xf9f   :  { %2328 = vtanh.f32 %v1809_v7 }
 0xfa5   :  { %v2327_v31 = vpop.eup %2326 }
 0xfa6   :  { %v1743_v9 = vmul.f32 %v2327_v31, %v1732_v13  ;;  %v1746_v35 = vsub.f32 1.0, %v2327_v31  ;;  %v1752_v50 = vmul.f32 %v2327_v31, %v3255_v6  ;;  %v1946_v13 = vsel %vm1196_vm2, %v3174_v59, %v1938_v28  ;;  %v2150_v59 = vld [vmem:[%s3376_s10] ss:$0 sm:$0xff] }
 0xfa8   :  { %v1744_v24 = vadd.f32 %v1743_v9, %v1684_v23 }
 0xfa9   :  { %v2329_v47 = vpop.eup %2328 }
 0xfaa   :  { %2330 = vtanh.f32 %v1744_v24  ;;  %1813 = vrot.lane.b32.xlu0 %v2329_v47, %s2579_s6 }
 0xfb4   :  { %v2331_v19 = vpop.eup %2330 }
 0xfb5   :  { %1748 = vrot.lane.b32.xlu1 %v2331_v19, %s2579_s6 }
0x101c   :  { %v1814_v33 = vpop.permute.xlu0 %1813 }
0x101d   :  { %v1816_v42 = vmul.f32 %v1814_v33, %v1811_v27 }
0x101f   :  { %v1821_v16 = vadd.f32 %v1820_v15, %v1816_v42 }
0x1021   :  { %v1822_v43 = vpack.c.bf16 %v1821_v16, %v1821_v16 }
0x1023   :  { %v1824_v39 = vrot.slane %v1822_v43, 3 }
0x1025   :  { %1825 = vrot.lane.b32.xlu0 %v1824_v39, %s2579_s6 }
0x1027   :  { %v1749_v10 = vpop.permute.xlu1 %1748 }
0x1028   :  { %v1751_v40 = vmul.f32 %v1749_v10, %v1746_v35 }
0x102a   :  { %v3298_v41 = vadd.f32 %v1752_v50, %v1751_v40 }
0x102c   :  { %v1871_v44 = vpack.c.bf16 %v3298_v41, %v3298_v41  ;;  %v1941_v52 = vrot.slane %v3298_v41, 4 }
0x102e   :  { %1873 = vrot.lane.b32.xlu1 %v1871_v44, %s2579_s6  ;;  %v1947_v31 = vsel %vm1198_vm3, %v1946_v13, %v1941_v52 }
0x1032   :  { %1203 = vrot.lane.b32.xlu1 %v1201_v8, %s2579_s6 }
0x1036   :  { %1956 = vrot.lane.b32.xlu1 %v1821_v16, %s2579_s6 }
0x1097   :  { %v1826_v17 = vpop.permute.xlu0 %1825 }
0x1098   :  { %2147 = vmatmul.mubr.msk.bf16.vlgmr.msra.gmra.mrb[44].mxu1 %vm217_vm1, %v1826_v17 }
0x1099   :  { %2169 = vmatprep.mubr.msk.bf16.mxu1 %vm2587_vm6, %v2586_v1 }
0x10a0   :  { %v1874_v32 = vpop.permute.xlu1 %1873 }
0x10a1   :  { %2148 = vmatmul.mubr.msk.bf16.vlgmr.msra.gmra.mrb[48].mxu0 %vm217_vm1, %v1874_v32 }
0x10a4   :  { %v1204_v51 = vpop.permute.xlu1 %1203 }
0x10a5   :  { %1206 = vst.msk [vmem:[#allocation4] sm:$0xff] %vm217_vm1, %v1204_v51 }
0x10a8   :  { %v1957_v45 = vpop.permute.xlu1 %1956 }
0x10a9   :  { %1960 = vst.msk [vmem:[#allocation2 - $0x6] sm:$0xc0] %vm1959_vm5, %v1957_v45 }
0x10ac   :  { %v1966_v9 = vld [vmem:[#allocation4] sm:$0xff] }
0x116b   :  { %v1864_v26 = vpop.f32.mrb[44].mxu1 }
0x116c   :  { %v1866_v46 = vpop.f32.mrb[45].mxu1  ;;  %v1865_v49 = vadd.f32 %v1864_v26, %v2928_v38 }
0x116d   :  { %v1868_v0 = vpop.f32.mrb[46].mxu1  ;;  %v1867_v57 = vadd.f32 %v1866_v46, %v2938_v22 }
0x116e   :  { %v1869_v25 = vpop.f32.mrb[47].mxu1 }
0x1174   :  { %v1912_v36 = vpop.f32.mrb[48].mxu0 }
0x1175   :  { %v1913_v63 = vadd.f32 %v1912_v36, %v2925_v37  ;;  %v1914_v3 = vpop.f32.mrb[49].mxu0  ;;  %v2238_v37 = vld [vmem:[%s3375_s9] sm:$0xff]  }
0x1176   :  { %v1916_v5 = vpop.f32.mrb[50].mxu0  ;;  %v1915_v56 = vadd.f32 %v1914_v3, %v2935_v20  ;;  %2162 = vmatpush3.bf16.msra.mxu1 %v2238_v37  ;;  %v2240_v20 = vld [vmem:[%s3375_s9 + $0x10] sm:$0xff]  }
0x1177   :  { %v1919_v11 = vadd.f32 %v1913_v63, %v1865_v49  ;;  %v1917_v12 = vpop.f32.mrb[51].mxu0  ;;  %2163 = vmatprep.subr.bf16.mxu1 %v2586_v1 }
0x1179   :  { %v2149_v18 = vmul.f32 -1.442695, %v1919_v11 }
0x117a   :  { %2164 = vmatpush3.bf16.msra.mxu1 %v2239_v61 }
0x117b   :  { %2332 = vpow2.f32 %v2149_v18  ;;  %2165 = vmatprep.subr.bf16.mxu1 %v2586_v1 }
0x117e   :  { %2166 = vmatpush3.bf16.msra.mxu1 %v2240_v20 }
0x117f   :  { %2167 = vmatprep.subr.bf16.mxu1 %v2586_v1 }
0x1182   :  { %2168 = vmatpush3.bf16.msra.mxu1 %v2241_v29 }
0x1185   :  { %v2333_v54 = vpop.eup %2332 }
0x1186   :  { %v1923_v55 = vadd.f32 1.0, %v2333_v54 }
0x1188   :  { %2334 = vrcp.f32 %v1923_v55 }
0x1192   :  { %v2335_v53 = vpop.eup %2334 }
0x1193   :  { %v1926_v60 = vmul.f32 %v2335_v53, %v1915_v56  ;;  %v1929_v22 = vsub.f32 1.0, %v2335_v53  ;;  %v1935_v14 = vmul.f32 %v2335_v53, %v3298_v41 }
0x1195   :  { %v1927_v30 = vadd.f32 %v1926_v60, %v1867_v57 }
0x1197   :  { %2336 = vtanh.f32 %v1927_v30 }
0x11a1   :  { %v2337_v38 = vpop.eup %2336 }
0x11a2   :  { %1931 = vrot.lane.b32.xlu0 %v2337_v38, %s2579_s6 }
0x1214   :  { %v1932_v58 = vpop.permute.xlu0 %1931 }
0x1215   :  { %v1934_v48 = vmul.f32 %v1932_v58, %v1929_v22 }
0x1217   :  { %v1936_v15 = vadd.f32 %v1935_v14, %v1934_v48 }
0x1219   :  { %v1944_v7 = vrot.slane %v1936_v15, 2 }
0x121b   :  { %v1948_v23 = vsel %vm1200_vm4, %v1947_v31, %v1944_v7 }
0x121c   :  { %1950 = vrot.lane.b32.xlu0 %v1948_v23, %s2579_s6 }
0x1220   :  { %1961 = vrot.lane.b32.xlu0 %v1936_v15, %s2579_s6  ;;  %s2539_s6 = scalar_lea.vmem %s2060_s4, 256 }
0x1221   :  { %p2540_p8 = scmp.ne.s32.totalorder %s2060_s4, %s2539_s6  ;;  %p2545_p10 = scmp.lt.s32.totalorder %s2539_s6, %s2539_s6 }
0x1223   :  { %p2546_p11 = por %p2545_p10, %p2544_p9 }
0x1225   :  { %p2547_p12 = pnand %p2546_p11, %p2540_p8 }
0x128e   :  { %v1951_v1 = vpop.permute.xlu0 %1950 }
0x128f   :  { %1954 = vst.msk [vmem:[#allocation4 + $0x8] sm:$0xff] %vm217_vm1, %v1951_v1 }
0x1292   :  { %v1962_v6 = vpop.permute.xlu0 %1961 }
0x1293   :  { %1965 = vst.msk [vmem:[#allocation2 + $0x2] sm:$0x3] %vm147_vm0, %v1962_v6 }
0x1296   :  { %v1967_v24 = vld [vmem:[#allocation4 + $0x8] sm:$0xff] }
0x1297   :  { %v1968_v47 = vpack.c.bf16 %v1967_v24, %v1966_v9 }
0x1299   :  { %2170 = vmatmul.mubr.msk.bf16.vlgmr.msra.gmra.mrb[48].mxu1 %vm217_vm1, %v1968_v47 }
0x136c   :  { %v2045_v19 = vpop.f32.mrb[48].mxu1 }
0x136d   :  { %v2046_v27 = vadd.f32 %v2150_v59, %v2045_v19  ;;  %v2171_v33 = vpop.f32.mrb[49].mxu1 }
0x136e   :  { %v2048_v42 = vpop.f32.mrb[50].mxu1 }
0x136f   :  { %2052 = vst [vmem:[#allocation19] sm:$0xff] %v2046_v27  ;;  %v2049_v16 = vadd.f32 %v2150_v59, %v2048_v42  ;;  %v2172_v43 = vpop.f32.mrb[51].mxu1 }
0x1371   :  { %2053 = vst [vmem:[#allocation19 + $0x8] sm:$0xff] %v2049_v16 }
0x1372   :  { %2550 = shalt.err (!%p2547_p12)
}
0x1373   :  { %s2551_s25 = scalar_lea.hbm %s3377_s11, 256 }
0x1374   :  { %p2552_p13 = scmp.ne.s32.totalorder %s3377_s11, %s2551_s25  ;;  %p2555_p0 = scmp.lt.u32.totalorder %s2551_s25, %s3377_s11 }
0x1376   :  { %p2557_p1 = pnand %p2555_p0, %p2552_p13 }
0x1378   :  { %2560 = shalt.err (!%p2557_p1)
}
0x1379   :  { %2065 = dma.vmem_to_hbm [thread:$0]  %s2060_s4, 256, %s3377_s11, [#allocation7], %s2574_s27, %s2574_s27, %s2575_s28  }
0x137a   :  { %2571 = dma.done.wait [#allocation7], 256  }
0x137b   :  { %2572 = vsyncadd [#allocation7], 4294967040 }
0x137c   :  { %2069 = vsyncpa [#allocation6], 1 }
0x137d   :  { %2070 = vsyncpa [#allocation9], 1 }
0x137e   :  { %2071 = vsyncpa [#allocation12], 1 }
0x137f   :  { %2072 = vsyncpa [#allocation15], 1 }
0x1380   :  { %2073 = vsyncpa [#allocation18], 1 }
0x1381   :  { %2074 = vsyncpa [#allocation7], 1 }

</bundles_post_ra>
